<compile_context>
chip_gen: v6e
topology: v6e:2x2x1
jax: 0.10.0
libtpu: 0.0.40
codegen_flags: <defaults>
</compile_context>

<pallas_src>
import jax
import jax.numpy as jnp
from jax.experimental import pallas as pl
from jax.experimental.pallas import tpu as pltpu  # noqa: F401  (TPU backend)


def _mul_kernel(scale_ref, x_ref, o_ref):
    # scale_ref: (rows, 1), x_ref: (rows, HW), o_ref: (rows, HW)
    o_ref[...] = scale_ref[...] * x_ref[...]


def broadcast_mul(scale_nc11: jax.Array, x_nchw: jax.Array) -> jax.Array:
    """Computes scale_nc11 * x_nchw with NCHW broadcast semantics (torch mul)."""
    n, c, h, w = x_nchw.shape
    assert scale_nc11.shape == (n, c, 1, 1)

    rows = n * c
    hw = h * w
    x2d = x_nchw.reshape(rows, hw)       # free reshape (contiguous)
    s2d = scale_nc11.reshape(rows, 1)    # per-row scale

    elem_bytes = jnp.dtype(x_nchw.dtype).itemsize

    out2d = pl.pallas_call(
        _mul_kernel,
        out_shape=jax.ShapeDtypeStruct((rows, hw), x_nchw.dtype),
        grid_spec=pl.GridSpec(
            # Single grid step: whole-array blocks (legal even though hw < 128
            # / rows not tile-aligned, because the block equals the full dims).
            grid=(1,),
            in_specs=[
                pl.BlockSpec((rows, 1), lambda i: (0, 0)),
                pl.BlockSpec((rows, hw), lambda i: (0, 0)),
            ],
            out_specs=pl.BlockSpec((rows, hw), lambda i: (0, 0)),
        ),
        cost_estimate=pl.CostEstimate(
            flops=rows * hw,
            bytes_accessed=2 * rows * hw * elem_bytes + rows * elem_bytes,
            transcendentals=0,
        ),
    )(s2d, x2d)

    return out2d.reshape(n, c, h, w)


if __name__ == "__main__":
    key = jax.random.PRNGKey(0)
    k1, k2 = jax.random.split(key)

    # Shapes implied by the module's forward.
    N, C, H, W = 1, 2304, 7, 7
    x753 = jax.random.normal(k1, (N, C, H, W), dtype=jnp.float32)
    x758 = jax.random.normal(k2, (N, C, 1, 1), dtype=jnp.float32)

    out = broadcast_mul(x758, x753)
    jax.block_until_ready(out)

    ref = x758 * x753
    assert out.shape == (N, C, H, W)
    assert jnp.allclose(out, ref, atol=1e-6, rtol=1e-6)

    print("KERNEL_OK")
</pallas_src>

<mosaic_0001>
module attributes {stable_mosaic.version = 11 : i64} {
  func.func @_mul_kernel(%arg0: i32, %arg1: memref<2304x1xf32, #tpu.memory_space<vmem>>, %arg2: memref<2304x49xf32, #tpu.memory_space<vmem>>, %arg3: memref<2304x49xf32, #tpu.memory_space<vmem>>) attributes {dimension_semantics = [#tpu.dimension_semantics<arbitrary>], iteration_bounds = array<i64: 1>, scalar_prefetch = 0 : i64, scratch_operands = 0 : i64, tpu.core_type = #tpu.core_type<tc>, window_params = [{pipeline_mode = #tpu.pipeline_mode<synchronous>, transform_indices = @transform_0, window_bounds = array<i64: 2304, 1>}, {pipeline_mode = #tpu.pipeline_mode<synchronous>, transform_indices = @transform_1, window_bounds = array<i64: 2304, 49>}, {pipeline_mode = #tpu.pipeline_mode<synchronous>, transform_indices = @transform_2, window_bounds = array<i64: 2304, 49>}]} {
    %c0 = arith.constant 0 : index
    %c0_0 = arith.constant 0 : index
    %0 = vector.load %arg1[%c0, %c0_0] : memref<2304x1xf32, #tpu.memory_space<vmem>>, vector<2304x1xf32>
    %c0_1 = arith.constant 0 : index
    %c0_2 = arith.constant 0 : index
    %1 = vector.load %arg2[%c0_1, %c0_2] : memref<2304x49xf32, #tpu.memory_space<vmem>>, vector<2304x49xf32>
    %2 = vector.broadcast %0 : vector<2304x1xf32> to vector<2304x49xf32>
    %3 = arith.mulf %2, %1 : vector<2304x49xf32>
    %c0_3 = arith.constant 0 : index
    %c0_4 = arith.constant 0 : index
    %4 = vector.load %arg3[%c0_3, %c0_4] : memref<2304x49xf32, #tpu.memory_space<vmem>>, vector<2304x49xf32>
    tpu.vector_store %arg3[%c0_3, %c0_4], %3 {strides = array<i32>} : memref<2304x49xf32, #tpu.memory_space<vmem>>, vector<2304x49xf32>,
    return
  }
  func.func @transform_0(%arg0: i32) -> (i32, i32) {
    %c0_i32 = arith.constant 0 : i32
    %c0_i32_0 = arith.constant 0 : i32
    %c0_i32_1 = arith.constant 0 : i32
    return %c0_i32, %c0_i32_0 : i32, i32
  }
  func.func @transform_1(%arg0: i32) -> (i32, i32) {
    %c0_i32 = arith.constant 0 : i32
    %c0_i32_0 = arith.constant 0 : i32
    %c0_i32_1 = arith.constant 0 : i32
    return %c0_i32, %c0_i32_0 : i32, i32
  }
  func.func @transform_2(%arg0: i32) -> (i32, i32) {
    %c0_i32 = arith.constant 0 : i32
    %c0_i32_0 = arith.constant 0 : i32
    %c0_i32_1 = arith.constant 0 : i32
    return %c0_i32, %c0_i32_0 : i32, i32
  }
}

</mosaic_0001>

<bundles_post_ra>
// kernel: tpu_custom_call.1
= control target key start
LH: loop header
LB: loop body
LE: loop exit
PB: predicated region body
PF: predicated region fallthrough
CT: control target
= control target key end

     0   :  { %v2611_v0 = vmov 0   ;;  %vm2315_vm0 = vcmask 400384   ;;  %s5507_s0 = inlined_call_operand.vmem [shape: f32[2304,1], index: 0, kind: input, shape index: {}]   ;;  %s5508_s1 = inlined_call_operand.vmem [shape: f32[2304,49], index: 1, kind: input, shape index: {}]   ;;  %s5509_s2 = inlined_call_operand.vmem [shape: f32[2304,49], index: 2, kind: output, shape index: {}]  }
   0x1   :  { %2610 = vset.pattern.permute.xlu1 %v2611_v0  ;;  %2609 = vset.pattern.permute.xlu0 %v2611_v0  ;;  %v13_v1 = vld [vmem:[%s5507_s0 + $0x10] sm:$0xff]  ;;  %v11_v2 = vld [vmem:[%s5507_s0] sm:$0xff]  ;;  %v14_v3 = vld [vmem:[%s5507_s0 + $0x18] sm:$0xff] }
   0x2   :  { %599 = vperm.xlu1 %2610, %v13_v1   ;;  %589 = vperm.xlu0 %2609, %v11_v2   ;;  %v12_v4 = vld [vmem:[%s5507_s0 + $0x8] sm:$0xff]  ;;  %v15_v6 = vld [vmem:[%s5507_s0 + $0x20] sm:$0xff]  ;;  %v18_v7 = vld [vmem:[%s5507_s0 + $0x38] sm:$0xff] }
   0x3   :  { %v16_v5 = vld [vmem:[%s5507_s0 + $0x28] sm:$0xff]  ;;  %v17_v8 = vld [vmem:[%s5507_s0 + $0x30] sm:$0xff]  ;;  %v19_v10 = vld [vmem:[%s5507_s0 + $0x40] sm:$0xff] }
   0x4   :  { %v20_v9 = vld [vmem:[%s5507_s0 + $0x48] sm:$0xff]  ;;  %v22_v11 = vld [vmem:[%s5507_s0 + $0x58] sm:$0xff]  ;;  %v21_v12 = vld [vmem:[%s5507_s0 + $0x50] sm:$0xff] }
   0x5   :  { %v24_v13 = vld [vmem:[%s5507_s0 + $0x68] sm:$0xff]  ;;  %v23_v14 = vld [vmem:[%s5507_s0 + $0x60] sm:$0xff]  ;;  %v26_v15 = vld [vmem:[%s5507_s0 + $0x78] sm:$0xff] }
   0x6   :  { %604 = vperm.xlu1 %2610, %v14_v3   ;;  %594 = vperm.xlu0 %2609, %v12_v4   ;;  %v25_v16 = vld [vmem:[%s5507_s0 + $0x70] sm:$0xff]  ;;  %v28_v17 = vld [vmem:[%s5507_s0 + $0x88] sm:$0xff]  ;;  %v27_v18 = vld [vmem:[%s5507_s0 + $0x80] sm:$0xff] }
   0x7   :  { %v30_v19 = vld [vmem:[%s5507_s0 + $0x98] sm:$0xff]  ;;  %v29_v20 = vld [vmem:[%s5507_s0 + $0x90] sm:$0xff]  ;;  %v32_v21 = vld [vmem:[%s5507_s0 + $0xa8] sm:$0xff] }
   0x8   :  { %v31_v22 = vld [vmem:[%s5507_s0 + $0xa0] sm:$0xff]  ;;  %v34_v23 = vld [vmem:[%s5507_s0 + $0xb8] sm:$0xff]  ;;  %v33_v24 = vld [vmem:[%s5507_s0 + $0xb0] sm:$0xff] }
   0x9   :  { %v36_v25 = vld [vmem:[%s5507_s0 + $0xc8] sm:$0xff]  ;;  %v35_v26 = vld [vmem:[%s5507_s0 + $0xc0] sm:$0xff]  ;;  %v38_v27 = vld [vmem:[%s5507_s0 + $0xd8] sm:$0xff] }
   0xa   :  { %614 = vperm.xlu1 %2610, %v16_v5   ;;  %609 = vperm.xlu0 %2609, %v15_v6   ;;  %v37_v28 = vld [vmem:[%s5507_s0 + $0xd0] sm:$0xff]  ;;  %v40_v29 = vld [vmem:[%s5507_s0 + $0xe8] sm:$0xff]  ;;  %v39_v30 = vld [vmem:[%s5507_s0 + $0xe0] sm:$0xff] }
   0xb   :  { %v42_v31 = vld [vmem:[%s5507_s0 + $0xf8] sm:$0xff]  ;;  %v41_v32 = vld [vmem:[%s5507_s0 + $0xf0] sm:$0xff]  ;;  %v44_v33 = vld [vmem:[%s5507_s0 + $0x108] sm:$0xff] }
   0xc   :  { %v43_v34 = vld [vmem:[%s5507_s0 + $0x100] sm:$0xff]  ;;  %v46_v35 = vld [vmem:[%s5507_s0 + $0x118] sm:$0xff]  ;;  %v45_v36 = vld [vmem:[%s5507_s0 + $0x110] sm:$0xff] }
   0xd   :  { %v48_v37 = vld [vmem:[%s5507_s0 + $0x128] sm:$0xff]  ;;  %v47_v38 = vld [vmem:[%s5507_s0 + $0x120] sm:$0xff]  ;;  %v50_v39 = vld [vmem:[%s5507_s0 + $0x138] sm:$0xff] }
   0xe   :  { %624 = vperm.xlu1 %2610, %v18_v7   ;;  %619 = vperm.xlu0 %2609, %v17_v8   ;;  %v49_v40 = vld [vmem:[%s5507_s0 + $0x130] sm:$0xff]  ;;  %v52_v41 = vld [vmem:[%s5507_s0 + $0x148] sm:$0xff]  ;;  %v51_v42 = vld [vmem:[%s5507_s0 + $0x140] sm:$0xff] }
   0xf   :  { %v54_v43 = vld [vmem:[%s5507_s0 + $0x158] sm:$0xff]  ;;  %v53_v44 = vld [vmem:[%s5507_s0 + $0x150] sm:$0xff]  ;;  %v56_v45 = vld [vmem:[%s5507_s0 + $0x168] sm:$0xff] }
  0x10   :  { %v55_v46 = vld [vmem:[%s5507_s0 + $0x160] sm:$0xff]  ;;  %v58_v47 = vld [vmem:[%s5507_s0 + $0x178] sm:$0xff]  ;;  %v57_v48 = vld [vmem:[%s5507_s0 + $0x170] sm:$0xff] }
  0x11   :  { %v60_v49 = vld [vmem:[%s5507_s0 + $0x188] sm:$0xff]  ;;  %v59_v50 = vld [vmem:[%s5507_s0 + $0x180] sm:$0xff]  ;;  %v62_v51 = vld [vmem:[%s5507_s0 + $0x198] sm:$0xff] }
  0x12   :  { %634 = vperm.xlu1 %2610, %v20_v9   ;;  %629 = vperm.xlu0 %2609, %v19_v10   ;;  %v61_v52 = vld [vmem:[%s5507_s0 + $0x190] sm:$0xff]  ;;  %v64_v53 = vld [vmem:[%s5507_s0 + $0x1a8] sm:$0xff]  ;;  %v63_v54 = vld [vmem:[%s5507_s0 + $0x1a0] sm:$0xff] }
  0x13   :  { %v66_v55 = vld [vmem:[%s5507_s0 + $0x1b8] sm:$0xff]  ;;  %v65_v56 = vld [vmem:[%s5507_s0 + $0x1b0] sm:$0xff]  ;;  %v68_v57 = vld [vmem:[%s5507_s0 + $0x1c8] sm:$0xff] }
  0x14   :  { %v67_v58 = vld [vmem:[%s5507_s0 + $0x1c0] sm:$0xff]  ;;  %v70_v59 = vld [vmem:[%s5507_s0 + $0x1d8] sm:$0xff]  ;;  %v69_v60 = vld [vmem:[%s5507_s0 + $0x1d0] sm:$0xff] }
  0x15   :  { %v72_v61 = vld [vmem:[%s5507_s0 + $0x1e8] sm:$0xff]  ;;  %v71_v62 = vld [vmem:[%s5507_s0 + $0x1e0] sm:$0xff]  ;;  %v301_v63 = vld [vmem:[%s5508_s1 + $0x10] sm:$0xff] }
  0x16   :  { %644 = vperm.xlu1 %2610, %v22_v11   ;;  %639 = vperm.xlu0 %2609, %v21_v12   ;;  %v299_v0 = vld [vmem:[%s5508_s1] sm:$0xff]  ;;  %v74_v1 = vld [vmem:[%s5507_s0 + $0x1f8] sm:$0xff]  ;;  %v73_v2 = vld [vmem:[%s5507_s0 + $0x1f0] sm:$0xff] }
  0x17   :  { %v302_v7 = vld [vmem:[%s5508_s1 + $0x18] sm:$0xff]  ;;  %v300_v8 = vld [vmem:[%s5508_s1 + $0x8] sm:$0xff]  ;;  %v75_v10 = vld [vmem:[%s5507_s0 + $0x200] sm:$0xff] }
  0x18   :  { %v76_v9 = vld [vmem:[%s5507_s0 + $0x208] sm:$0xff] }
  0x1a   :  { %654 = vperm.xlu1 %2610, %v24_v13   ;;  %649 = vperm.xlu0 %2609, %v23_v14  }
  0x1e   :  { %664 = vperm.xlu1 %2610, %v26_v15   ;;  %659 = vperm.xlu0 %2609, %v25_v16   ;;  %v304_v15 = vld [vmem:[%s5508_s1 + $0x28] sm:$0xff]  ;;  %v303_v16 = vld [vmem:[%s5508_s1 + $0x20] sm:$0xff] }
  0x22   :  { %674 = vperm.xlu1 %2610, %v28_v17   ;;  %669 = vperm.xlu0 %2609, %v27_v18   ;;  %v78_v17 = vld [vmem:[%s5507_s0 + $0x218] sm:$0xff]  ;;  %v77_v18 = vld [vmem:[%s5507_s0 + $0x210] sm:$0xff] }
  0x26   :  { %684 = vperm.xlu1 %2610, %v30_v19   ;;  %679 = vperm.xlu0 %2609, %v29_v20  }
  0x2a   :  { %694 = vperm.xlu1 %2610, %v32_v21   ;;  %689 = vperm.xlu0 %2609, %v31_v22  }
  0x2e   :  { %704 = vperm.xlu1 %2610, %v34_v23   ;;  %699 = vperm.xlu0 %2609, %v33_v24   ;;  %v306_v23 = vld [vmem:[%s5508_s1 + $0x38] sm:$0xff]  ;;  %v305_v24 = vld [vmem:[%s5508_s1 + $0x30] sm:$0xff] }
  0x32   :  { %714 = vperm.xlu1 %2610, %v36_v25   ;;  %709 = vperm.xlu0 %2609, %v35_v26   ;;  %v80_v25 = vld [vmem:[%s5507_s0 + $0x228] sm:$0xff]  ;;  %v79_v26 = vld [vmem:[%s5507_s0 + $0x220] sm:$0xff] }
  0x36   :  { %724 = vperm.xlu1 %2610, %v38_v27   ;;  %719 = vperm.xlu0 %2609, %v37_v28  }
  0x3a   :  { %734 = vperm.xlu1 %2610, %v40_v29   ;;  %729 = vperm.xlu0 %2609, %v39_v30  }
  0x3e   :  { %744 = vperm.xlu1 %2610, %v42_v31   ;;  %739 = vperm.xlu0 %2609, %v41_v32   ;;  %v308_v31 = vld [vmem:[%s5508_s1 + $0x48] sm:$0xff]  ;;  %v307_v32 = vld [vmem:[%s5508_s1 + $0x40] sm:$0xff] }
  0x42   :  { %754 = vperm.xlu1 %2610, %v44_v33   ;;  %749 = vperm.xlu0 %2609, %v43_v34   ;;  %v82_v33 = vld [vmem:[%s5507_s0 + $0x238] sm:$0xff]  ;;  %v81_v34 = vld [vmem:[%s5507_s0 + $0x230] sm:$0xff] }
  0x46   :  { %764 = vperm.xlu1 %2610, %v46_v35   ;;  %759 = vperm.xlu0 %2609, %v45_v36  }
  0x4a   :  { %774 = vperm.xlu1 %2610, %v48_v37   ;;  %769 = vperm.xlu0 %2609, %v47_v38  }
  0x4e   :  { %784 = vperm.xlu1 %2610, %v50_v39   ;;  %779 = vperm.xlu0 %2609, %v49_v40   ;;  %v310_v39 = vld [vmem:[%s5508_s1 + $0x58] sm:$0xff]  ;;  %v309_v40 = vld [vmem:[%s5508_s1 + $0x50] sm:$0xff] }
  0x52   :  { %794 = vperm.xlu1 %2610, %v52_v41   ;;  %789 = vperm.xlu0 %2609, %v51_v42   ;;  %v84_v41 = vld [vmem:[%s5507_s0 + $0x248] sm:$0xff]  ;;  %v83_v42 = vld [vmem:[%s5507_s0 + $0x240] sm:$0xff] }
  0x56   :  { %804 = vperm.xlu1 %2610, %v54_v43   ;;  %799 = vperm.xlu0 %2609, %v53_v44  }
  0x5a   :  { %814 = vperm.xlu1 %2610, %v56_v45   ;;  %809 = vperm.xlu0 %2609, %v55_v46  }
  0x5e   :  { %824 = vperm.xlu1 %2610, %v58_v47   ;;  %819 = vperm.xlu0 %2609, %v57_v48   ;;  %v312_v47 = vld [vmem:[%s5508_s1 + $0x68] sm:$0xff]  ;;  %v311_v48 = vld [vmem:[%s5508_s1 + $0x60] sm:$0xff] }
  0x62   :  { %834 = vperm.xlu1 %2610, %v60_v49   ;;  %829 = vperm.xlu0 %2609, %v59_v50   ;;  %v86_v49 = vld [vmem:[%s5507_s0 + $0x258] sm:$0xff]  ;;  %v85_v50 = vld [vmem:[%s5507_s0 + $0x250] sm:$0xff] }
  0x66   :  { %844 = vperm.xlu1 %2610, %v62_v51   ;;  %839 = vperm.xlu0 %2609, %v61_v52  }
  0x6a   :  { %854 = vperm.xlu1 %2610, %v64_v53   ;;  %849 = vperm.xlu0 %2609, %v63_v54  }
  0x6e   :  { %864 = vperm.xlu1 %2610, %v66_v55   ;;  %859 = vperm.xlu0 %2609, %v65_v56   ;;  %v314_v55 = vld [vmem:[%s5508_s1 + $0x78] sm:$0xff]  ;;  %v313_v56 = vld [vmem:[%s5508_s1 + $0x70] sm:$0xff] }
  0x72   :  { %874 = vperm.xlu1 %2610, %v68_v57   ;;  %869 = vperm.xlu0 %2609, %v67_v58   ;;  %v88_v57 = vld [vmem:[%s5507_s0 + $0x268] sm:$0xff]  ;;  %v87_v58 = vld [vmem:[%s5507_s0 + $0x260] sm:$0xff] }
  0x76   :  { %884 = vperm.xlu1 %2610, %v70_v59   ;;  %879 = vperm.xlu0 %2609, %v69_v60  }
  0x7a   :  { %894 = vperm.xlu1 %2610, %v72_v61   ;;  %889 = vperm.xlu0 %2609, %v71_v62  }
  0x7d   :  { %v600_v3 = vpop.permute.xlu1 %599  ;;  %v590_v4 = vpop.permute.xlu0 %589 }
  0x7e   :  { %v2029_v5 = vmul.f32 %v600_v3, %v301_v63  ;;  %v2027_v6 = vmul.f32 %v590_v4, %v299_v0  ;;  %904 = vperm.xlu1 %2610, %v74_v1   ;;  %899 = vperm.xlu0 %2609, %v73_v2   ;;  %v316_v63 = vld [vmem:[%s5508_s1 + $0x88] sm:$0xff]  ;;  %v315_v0 = vld [vmem:[%s5508_s1 + $0x80] sm:$0xff]  ;;  %v90_v1 = vld [vmem:[%s5507_s0 + $0x278] sm:$0xff] }
  0x7f   :  { %v89_v2 = vld [vmem:[%s5507_s0 + $0x270] sm:$0xff] }
  0x80   :  { %2318 = vst.msk [vmem:[%s5509_s2 + $0x10] sm:$0xff] %vm2315_vm0, %v2029_v5  ;;  %2316 = vst.msk [vmem:[%s5509_s2] sm:$0xff] %vm2315_vm0, %v2027_v6 }
  0x81   :  { %v605_v11 = vpop.permute.xlu1 %604  ;;  %v595_v12 = vpop.permute.xlu0 %594 }
  0x82   :  { %v2030_v13 = vmul.f32 %v605_v11, %v302_v7  ;;  %v2028_v14 = vmul.f32 %v595_v12, %v300_v8  ;;  %914 = vperm.xlu1 %2610, %v76_v9   ;;  %909 = vperm.xlu0 %2609, %v75_v10   ;;  %v318_v7 = vld [vmem:[%s5508_s1 + $0x98] sm:$0xff]  ;;  %v317_v8 = vld [vmem:[%s5508_s1 + $0x90] sm:$0xff]  ;;  %v92_v9 = vld [vmem:[%s5507_s0 + $0x288] sm:$0xff] }
  0x83   :  { %v91_v10 = vld [vmem:[%s5507_s0 + $0x280] sm:$0xff] }
  0x84   :  { %2319 = vst.msk [vmem:[%s5509_s2 + $0x18] sm:$0xff] %vm2315_vm0, %v2030_v13  ;;  %2317 = vst.msk [vmem:[%s5509_s2 + $0x8] sm:$0xff] %vm2315_vm0, %v2028_v14 }
  0x85   :  { %v615_v19 = vpop.permute.xlu1 %614  ;;  %v610_v20 = vpop.permute.xlu0 %609 }
  0x86   :  { %v2032_v21 = vmul.f32 %v615_v19, %v304_v15  ;;  %v2031_v22 = vmul.f32 %v610_v20, %v303_v16  ;;  %924 = vperm.xlu1 %2610, %v78_v17   ;;  %919 = vperm.xlu0 %2609, %v77_v18   ;;  %v320_v15 = vld [vmem:[%s5508_s1 + $0xa8] sm:$0xff]  ;;  %v319_v16 = vld [vmem:[%s5508_s1 + $0xa0] sm:$0xff]  ;;  %v94_v17 = vld [vmem:[%s5507_s0 + $0x298] sm:$0xff] }
  0x87   :  { %v93_v18 = vld [vmem:[%s5507_s0 + $0x290] sm:$0xff] }
  0x88   :  { %2321 = vst.msk [vmem:[%s5509_s2 + $0x28] sm:$0xff] %vm2315_vm0, %v2032_v21  ;;  %2320 = vst.msk [vmem:[%s5509_s2 + $0x20] sm:$0xff] %vm2315_vm0, %v2031_v22 }
  0x89   :  { %v625_v27 = vpop.permute.xlu1 %624  ;;  %v620_v28 = vpop.permute.xlu0 %619 }
  0x8a   :  { %v2034_v29 = vmul.f32 %v625_v27, %v306_v23  ;;  %v2033_v30 = vmul.f32 %v620_v28, %v305_v24  ;;  %934 = vperm.xlu1 %2610, %v80_v25   ;;  %929 = vperm.xlu0 %2609, %v79_v26   ;;  %v322_v23 = vld [vmem:[%s5508_s1 + $0xb8] sm:$0xff]  ;;  %v321_v24 = vld [vmem:[%s5508_s1 + $0xb0] sm:$0xff]  ;;  %v96_v25 = vld [vmem:[%s5507_s0 + $0x2a8] sm:$0xff] }
  0x8b   :  { %v95_v26 = vld [vmem:[%s5507_s0 + $0x2a0] sm:$0xff] }
  0x8c   :  { %2323 = vst.msk [vmem:[%s5509_s2 + $0x38] sm:$0xff] %vm2315_vm0, %v2034_v29  ;;  %2322 = vst.msk [vmem:[%s5509_s2 + $0x30] sm:$0xff] %vm2315_vm0, %v2033_v30 }
  0x8d   :  { %v635_v35 = vpop.permute.xlu1 %634  ;;  %v630_v36 = vpop.permute.xlu0 %629 }
  0x8e   :  { %v2036_v37 = vmul.f32 %v635_v35, %v308_v31  ;;  %v2035_v38 = vmul.f32 %v630_v36, %v307_v32  ;;  %944 = vperm.xlu1 %2610, %v82_v33   ;;  %939 = vperm.xlu0 %2609, %v81_v34   ;;  %v324_v31 = vld [vmem:[%s5508_s1 + $0xc8] sm:$0xff]  ;;  %v323_v32 = vld [vmem:[%s5508_s1 + $0xc0] sm:$0xff]  ;;  %v98_v33 = vld [vmem:[%s5507_s0 + $0x2b8] sm:$0xff] }
  0x8f   :  { %v97_v34 = vld [vmem:[%s5507_s0 + $0x2b0] sm:$0xff] }
  0x90   :  { %2325 = vst.msk [vmem:[%s5509_s2 + $0x48] sm:$0xff] %vm2315_vm0, %v2036_v37  ;;  %2324 = vst.msk [vmem:[%s5509_s2 + $0x40] sm:$0xff] %vm2315_vm0, %v2035_v38 }
  0x91   :  { %v645_v43 = vpop.permute.xlu1 %644  ;;  %v640_v44 = vpop.permute.xlu0 %639 }
  0x92   :  { %v2038_v45 = vmul.f32 %v645_v43, %v310_v39  ;;  %v2037_v46 = vmul.f32 %v640_v44, %v309_v40  ;;  %954 = vperm.xlu1 %2610, %v84_v41   ;;  %949 = vperm.xlu0 %2609, %v83_v42   ;;  %v326_v39 = vld [vmem:[%s5508_s1 + $0xd8] sm:$0xff]  ;;  %v325_v40 = vld [vmem:[%s5508_s1 + $0xd0] sm:$0xff]  ;;  %v100_v41 = vld [vmem:[%s5507_s0 + $0x2c8] sm:$0xff] }
  0x93   :  { %v99_v42 = vld [vmem:[%s5507_s0 + $0x2c0] sm:$0xff] }
  0x94   :  { %2327 = vst.msk [vmem:[%s5509_s2 + $0x58] sm:$0xff] %vm2315_vm0, %v2038_v45  ;;  %2326 = vst.msk [vmem:[%s5509_s2 + $0x50] sm:$0xff] %vm2315_vm0, %v2037_v46 }
  0x95   :  { %v655_v51 = vpop.permute.xlu1 %654  ;;  %v650_v52 = vpop.permute.xlu0 %649 }
  0x96   :  { %v2040_v53 = vmul.f32 %v655_v51, %v312_v47  ;;  %v2039_v54 = vmul.f32 %v650_v52, %v311_v48  ;;  %964 = vperm.xlu1 %2610, %v86_v49   ;;  %959 = vperm.xlu0 %2609, %v85_v50   ;;  %v328_v47 = vld [vmem:[%s5508_s1 + $0xe8] sm:$0xff]  ;;  %v327_v48 = vld [vmem:[%s5508_s1 + $0xe0] sm:$0xff]  ;;  %v102_v49 = vld [vmem:[%s5507_s0 + $0x2d8] sm:$0xff] }
  0x97   :  { %v101_v50 = vld [vmem:[%s5507_s0 + $0x2d0] sm:$0xff] }
  0x98   :  { %2329 = vst.msk [vmem:[%s5509_s2 + $0x68] sm:$0xff] %vm2315_vm0, %v2040_v53  ;;  %2328 = vst.msk [vmem:[%s5509_s2 + $0x60] sm:$0xff] %vm2315_vm0, %v2039_v54 }
  0x99   :  { %v665_v59 = vpop.permute.xlu1 %664  ;;  %v660_v60 = vpop.permute.xlu0 %659 }
  0x9a   :  { %v2042_v61 = vmul.f32 %v665_v59, %v314_v55  ;;  %v2041_v62 = vmul.f32 %v660_v60, %v313_v56  ;;  %974 = vperm.xlu1 %2610, %v88_v57   ;;  %969 = vperm.xlu0 %2609, %v87_v58   ;;  %v330_v55 = vld [vmem:[%s5508_s1 + $0xf8] sm:$0xff]  ;;  %v329_v56 = vld [vmem:[%s5508_s1 + $0xf0] sm:$0xff]  ;;  %v104_v57 = vld [vmem:[%s5507_s0 + $0x2e8] sm:$0xff] }
  0x9b   :  { %v103_v58 = vld [vmem:[%s5507_s0 + $0x2e0] sm:$0xff] }
  0x9c   :  { %2331 = vst.msk [vmem:[%s5509_s2 + $0x78] sm:$0xff] %vm2315_vm0, %v2042_v61  ;;  %2330 = vst.msk [vmem:[%s5509_s2 + $0x70] sm:$0xff] %vm2315_vm0, %v2041_v62 }
  0x9d   :  { %v675_v3 = vpop.permute.xlu1 %674  ;;  %v670_v4 = vpop.permute.xlu0 %669 }
  0x9e   :  { %v2044_v5 = vmul.f32 %v675_v3, %v316_v63  ;;  %v2043_v6 = vmul.f32 %v670_v4, %v315_v0  ;;  %984 = vperm.xlu1 %2610, %v90_v1   ;;  %979 = vperm.xlu0 %2609, %v89_v2   ;;  %v332_v63 = vld [vmem:[%s5508_s1 + $0x108] sm:$0xff]  ;;  %v331_v0 = vld [vmem:[%s5508_s1 + $0x100] sm:$0xff]  ;;  %v106_v1 = vld [vmem:[%s5507_s0 + $0x2f8] sm:$0xff] }
  0x9f   :  { %v105_v2 = vld [vmem:[%s5507_s0 + $0x2f0] sm:$0xff] }
  0xa0   :  { %2333 = vst.msk [vmem:[%s5509_s2 + $0x88] sm:$0xff] %vm2315_vm0, %v2044_v5  ;;  %2332 = vst.msk [vmem:[%s5509_s2 + $0x80] sm:$0xff] %vm2315_vm0, %v2043_v6 }
  0xa1   :  { %v685_v11 = vpop.permute.xlu1 %684  ;;  %v680_v12 = vpop.permute.xlu0 %679 }
  0xa2   :  { %v2046_v13 = vmul.f32 %v685_v11, %v318_v7  ;;  %v2045_v14 = vmul.f32 %v680_v12, %v317_v8  ;;  %994 = vperm.xlu1 %2610, %v92_v9   ;;  %989 = vperm.xlu0 %2609, %v91_v10   ;;  %v334_v7 = vld [vmem:[%s5508_s1 + $0x118] sm:$0xff]  ;;  %v333_v8 = vld [vmem:[%s5508_s1 + $0x110] sm:$0xff]  ;;  %v108_v9 = vld [vmem:[%s5507_s0 + $0x308] sm:$0xff] }
  0xa3   :  { %v107_v10 = vld [vmem:[%s5507_s0 + $0x300] sm:$0xff] }
  0xa4   :  { %2335 = vst.msk [vmem:[%s5509_s2 + $0x98] sm:$0xff] %vm2315_vm0, %v2046_v13  ;;  %2334 = vst.msk [vmem:[%s5509_s2 + $0x90] sm:$0xff] %vm2315_vm0, %v2045_v14 }
  0xa5   :  { %v695_v19 = vpop.permute.xlu1 %694  ;;  %v690_v20 = vpop.permute.xlu0 %689 }
  0xa6   :  { %v2048_v21 = vmul.f32 %v695_v19, %v320_v15  ;;  %v2047_v22 = vmul.f32 %v690_v20, %v319_v16  ;;  %1004 = vperm.xlu1 %2610, %v94_v17   ;;  %999 = vperm.xlu0 %2609, %v93_v18   ;;  %v336_v15 = vld [vmem:[%s5508_s1 + $0x128] sm:$0xff]  ;;  %v335_v16 = vld [vmem:[%s5508_s1 + $0x120] sm:$0xff]  ;;  %v110_v17 = vld [vmem:[%s5507_s0 + $0x318] sm:$0xff] }
  0xa7   :  { %v109_v18 = vld [vmem:[%s5507_s0 + $0x310] sm:$0xff] }
  0xa8   :  { %2337 = vst.msk [vmem:[%s5509_s2 + $0xa8] sm:$0xff] %vm2315_vm0, %v2048_v21  ;;  %2336 = vst.msk [vmem:[%s5509_s2 + $0xa0] sm:$0xff] %vm2315_vm0, %v2047_v22 }
  0xa9   :  { %v705_v27 = vpop.permute.xlu1 %704  ;;  %v700_v28 = vpop.permute.xlu0 %699 }
  0xaa   :  { %v2050_v29 = vmul.f32 %v705_v27, %v322_v23  ;;  %v2049_v30 = vmul.f32 %v700_v28, %v321_v24  ;;  %1014 = vperm.xlu1 %2610, %v96_v25   ;;  %1009 = vperm.xlu0 %2609, %v95_v26   ;;  %v338_v23 = vld [vmem:[%s5508_s1 + $0x138] sm:$0xff]  ;;  %v337_v24 = vld [vmem:[%s5508_s1 + $0x130] sm:$0xff]  ;;  %v112_v25 = vld [vmem:[%s5507_s0 + $0x328] sm:$0xff] }
  0xab   :  { %v111_v26 = vld [vmem:[%s5507_s0 + $0x320] sm:$0xff] }
  0xac   :  { %2339 = vst.msk [vmem:[%s5509_s2 + $0xb8] sm:$0xff] %vm2315_vm0, %v2050_v29  ;;  %2338 = vst.msk [vmem:[%s5509_s2 + $0xb0] sm:$0xff] %vm2315_vm0, %v2049_v30 }
  0xad   :  { %v715_v35 = vpop.permute.xlu1 %714  ;;  %v710_v36 = vpop.permute.xlu0 %709 }
  0xae   :  { %v2052_v37 = vmul.f32 %v715_v35, %v324_v31  ;;  %v2051_v38 = vmul.f32 %v710_v36, %v323_v32  ;;  %1024 = vperm.xlu1 %2610, %v98_v33   ;;  %1019 = vperm.xlu0 %2609, %v97_v34   ;;  %v340_v31 = vld [vmem:[%s5508_s1 + $0x148] sm:$0xff]  ;;  %v339_v32 = vld [vmem:[%s5508_s1 + $0x140] sm:$0xff]  ;;  %v114_v33 = vld [vmem:[%s5507_s0 + $0x338] sm:$0xff] }
  0xaf   :  { %v113_v34 = vld [vmem:[%s5507_s0 + $0x330] sm:$0xff] }
  0xb0   :  { %2341 = vst.msk [vmem:[%s5509_s2 + $0xc8] sm:$0xff] %vm2315_vm0, %v2052_v37  ;;  %2340 = vst.msk [vmem:[%s5509_s2 + $0xc0] sm:$0xff] %vm2315_vm0, %v2051_v38 }
  0xb1   :  { %v725_v43 = vpop.permute.xlu1 %724  ;;  %v720_v44 = vpop.permute.xlu0 %719 }
  0xb2   :  { %v2054_v45 = vmul.f32 %v725_v43, %v326_v39  ;;  %v2053_v46 = vmul.f32 %v720_v44, %v325_v40  ;;  %1034 = vperm.xlu1 %2610, %v100_v41   ;;  %1029 = vperm.xlu0 %2609, %v99_v42   ;;  %v342_v39 = vld [vmem:[%s5508_s1 + $0x158] sm:$0xff]  ;;  %v341_v40 = vld [vmem:[%s5508_s1 + $0x150] sm:$0xff]  ;;  %v116_v41 = vld [vmem:[%s5507_s0 + $0x348] sm:$0xff] }
  0xb3   :  { %v115_v42 = vld [vmem:[%s5507_s0 + $0x340] sm:$0xff] }
  0xb4   :  { %2343 = vst.msk [vmem:[%s5509_s2 + $0xd8] sm:$0xff] %vm2315_vm0, %v2054_v45  ;;  %2342 = vst.msk [vmem:[%s5509_s2 + $0xd0] sm:$0xff] %vm2315_vm0, %v2053_v46 }
  0xb5   :  { %v735_v51 = vpop.permute.xlu1 %734  ;;  %v730_v52 = vpop.permute.xlu0 %729 }
  0xb6   :  { %v2056_v53 = vmul.f32 %v735_v51, %v328_v47  ;;  %v2055_v54 = vmul.f32 %v730_v52, %v327_v48  ;;  %1044 = vperm.xlu1 %2610, %v102_v49   ;;  %1039 = vperm.xlu0 %2609, %v101_v50   ;;  %v344_v47 = vld [vmem:[%s5508_s1 + $0x168] sm:$0xff]  ;;  %v343_v48 = vld [vmem:[%s5508_s1 + $0x160] sm:$0xff]  ;;  %v118_v49 = vld [vmem:[%s5507_s0 + $0x358] sm:$0xff] }
  0xb7   :  { %v117_v50 = vld [vmem:[%s5507_s0 + $0x350] sm:$0xff] }
  0xb8   :  { %2345 = vst.msk [vmem:[%s5509_s2 + $0xe8] sm:$0xff] %vm2315_vm0, %v2056_v53  ;;  %2344 = vst.msk [vmem:[%s5509_s2 + $0xe0] sm:$0xff] %vm2315_vm0, %v2055_v54 }
  0xb9   :  { %v745_v59 = vpop.permute.xlu1 %744  ;;  %v740_v60 = vpop.permute.xlu0 %739 }
  0xba   :  { %v2058_v61 = vmul.f32 %v745_v59, %v330_v55  ;;  %v2057_v62 = vmul.f32 %v740_v60, %v329_v56  ;;  %1054 = vperm.xlu1 %2610, %v104_v57   ;;  %1049 = vperm.xlu0 %2609, %v103_v58   ;;  %v346_v55 = vld [vmem:[%s5508_s1 + $0x178] sm:$0xff]  ;;  %v345_v56 = vld [vmem:[%s5508_s1 + $0x170] sm:$0xff]  ;;  %v120_v57 = vld [vmem:[%s5507_s0 + $0x368] sm:$0xff] }
  0xbb   :  { %v119_v58 = vld [vmem:[%s5507_s0 + $0x360] sm:$0xff] }
  0xbc   :  { %2347 = vst.msk [vmem:[%s5509_s2 + $0xf8] sm:$0xff] %vm2315_vm0, %v2058_v61  ;;  %2346 = vst.msk [vmem:[%s5509_s2 + $0xf0] sm:$0xff] %vm2315_vm0, %v2057_v62 }
  0xbd   :  { %v755_v3 = vpop.permute.xlu1 %754  ;;  %v750_v4 = vpop.permute.xlu0 %749 }
  0xbe   :  { %v2060_v5 = vmul.f32 %v755_v3, %v332_v63  ;;  %v2059_v6 = vmul.f32 %v750_v4, %v331_v0  ;;  %1064 = vperm.xlu1 %2610, %v106_v1   ;;  %1059 = vperm.xlu0 %2609, %v105_v2   ;;  %v348_v63 = vld [vmem:[%s5508_s1 + $0x188] sm:$0xff]  ;;  %v347_v0 = vld [vmem:[%s5508_s1 + $0x180] sm:$0xff]  ;;  %v122_v1 = vld [vmem:[%s5507_s0 + $0x378] sm:$0xff] }
  0xbf   :  { %v121_v2 = vld [vmem:[%s5507_s0 + $0x370] sm:$0xff] }
  0xc0   :  { %2349 = vst.msk [vmem:[%s5509_s2 + $0x108] sm:$0xff] %vm2315_vm0, %v2060_v5  ;;  %2348 = vst.msk [vmem:[%s5509_s2 + $0x100] sm:$0xff] %vm2315_vm0, %v2059_v6 }
  0xc1   :  { %v765_v11 = vpop.permute.xlu1 %764  ;;  %v760_v12 = vpop.permute.xlu0 %759 }
  0xc2   :  { %v2062_v13 = vmul.f32 %v765_v11, %v334_v7  ;;  %v2061_v14 = vmul.f32 %v760_v12, %v333_v8  ;;  %1074 = vperm.xlu1 %2610, %v108_v9   ;;  %1069 = vperm.xlu0 %2609, %v107_v10   ;;  %v350_v7 = vld [vmem:[%s5508_s1 + $0x198] sm:$0xff]  ;;  %v349_v8 = vld [vmem:[%s5508_s1 + $0x190] sm:$0xff]  ;;  %v124_v9 = vld [vmem:[%s5507_s0 + $0x388] sm:$0xff] }
  0xc3   :  { %v123_v10 = vld [vmem:[%s5507_s0 + $0x380] sm:$0xff] }
  0xc4   :  { %2351 = vst.msk [vmem:[%s5509_s2 + $0x118] sm:$0xff] %vm2315_vm0, %v2062_v13  ;;  %2350 = vst.msk [vmem:[%s5509_s2 + $0x110] sm:$0xff] %vm2315_vm0, %v2061_v14 }
  0xc5   :  { %v775_v19 = vpop.permute.xlu1 %774  ;;  %v770_v20 = vpop.permute.xlu0 %769 }
  0xc6   :  { %v2064_v21 = vmul.f32 %v775_v19, %v336_v15  ;;  %v2063_v22 = vmul.f32 %v770_v20, %v335_v16  ;;  %1084 = vperm.xlu1 %2610, %v110_v17   ;;  %1079 = vperm.xlu0 %2609, %v109_v18   ;;  %v352_v15 = vld [vmem:[%s5508_s1 + $0x1a8] sm:$0xff]  ;;  %v351_v16 = vld [vmem:[%s5508_s1 + $0x1a0] sm:$0xff]  ;;  %v126_v17 = vld [vmem:[%s5507_s0 + $0x398] sm:$0xff] }
  0xc7   :  { %v125_v18 = vld [vmem:[%s5507_s0 + $0x390] sm:$0xff] }
  0xc8   :  { %2353 = vst.msk [vmem:[%s5509_s2 + $0x128] sm:$0xff] %vm2315_vm0, %v2064_v21  ;;  %2352 = vst.msk [vmem:[%s5509_s2 + $0x120] sm:$0xff] %vm2315_vm0, %v2063_v22 }
  0xc9   :  { %v785_v27 = vpop.permute.xlu1 %784  ;;  %v780_v28 = vpop.permute.xlu0 %779 }
  0xca   :  { %v2066_v29 = vmul.f32 %v785_v27, %v338_v23  ;;  %v2065_v30 = vmul.f32 %v780_v28, %v337_v24  ;;  %1094 = vperm.xlu1 %2610, %v112_v25   ;;  %1089 = vperm.xlu0 %2609, %v111_v26   ;;  %v354_v23 = vld [vmem:[%s5508_s1 + $0x1b8] sm:$0xff]  ;;  %v353_v24 = vld [vmem:[%s5508_s1 + $0x1b0] sm:$0xff]  ;;  %v128_v25 = vld [vmem:[%s5507_s0 + $0x3a8] sm:$0xff] }
  0xcb   :  { %v127_v26 = vld [vmem:[%s5507_s0 + $0x3a0] sm:$0xff] }
  0xcc   :  { %2355 = vst.msk [vmem:[%s5509_s2 + $0x138] sm:$0xff] %vm2315_vm0, %v2066_v29  ;;  %2354 = vst.msk [vmem:[%s5509_s2 + $0x130] sm:$0xff] %vm2315_vm0, %v2065_v30 }
  0xcd   :  { %v795_v35 = vpop.permute.xlu1 %794  ;;  %v790_v36 = vpop.permute.xlu0 %789 }
  0xce   :  { %v2068_v37 = vmul.f32 %v795_v35, %v340_v31  ;;  %v2067_v38 = vmul.f32 %v790_v36, %v339_v32  ;;  %1104 = vperm.xlu1 %2610, %v114_v33   ;;  %1099 = vperm.xlu0 %2609, %v113_v34   ;;  %v356_v31 = vld [vmem:[%s5508_s1 + $0x1c8] sm:$0xff]  ;;  %v355_v32 = vld [vmem:[%s5508_s1 + $0x1c0] sm:$0xff]  ;;  %v130_v33 = vld [vmem:[%s5507_s0 + $0x3b8] sm:$0xff] }
  0xcf   :  { %v129_v34 = vld [vmem:[%s5507_s0 + $0x3b0] sm:$0xff] }
  0xd0   :  { %2357 = vst.msk [vmem:[%s5509_s2 + $0x148] sm:$0xff] %vm2315_vm0, %v2068_v37  ;;  %2356 = vst.msk [vmem:[%s5509_s2 + $0x140] sm:$0xff] %vm2315_vm0, %v2067_v38 }
  0xd1   :  { %v805_v43 = vpop.permute.xlu1 %804  ;;  %v800_v44 = vpop.permute.xlu0 %799 }
  0xd2   :  { %v2070_v45 = vmul.f32 %v805_v43, %v342_v39  ;;  %v2069_v46 = vmul.f32 %v800_v44, %v341_v40  ;;  %1114 = vperm.xlu1 %2610, %v116_v41   ;;  %1109 = vperm.xlu0 %2609, %v115_v42   ;;  %v358_v39 = vld [vmem:[%s5508_s1 + $0x1d8] sm:$0xff]  ;;  %v357_v40 = vld [vmem:[%s5508_s1 + $0x1d0] sm:$0xff]  ;;  %v132_v41 = vld [vmem:[%s5507_s0 + $0x3c8] sm:$0xff] }
  0xd3   :  { %v131_v42 = vld [vmem:[%s5507_s0 + $0x3c0] sm:$0xff] }
  0xd4   :  { %2359 = vst.msk [vmem:[%s5509_s2 + $0x158] sm:$0xff] %vm2315_vm0, %v2070_v45  ;;  %2358 = vst.msk [vmem:[%s5509_s2 + $0x150] sm:$0xff] %vm2315_vm0, %v2069_v46 }
  0xd5   :  { %v815_v51 = vpop.permute.xlu1 %814  ;;  %v810_v52 = vpop.permute.xlu0 %809 }
  0xd6   :  { %v2072_v53 = vmul.f32 %v815_v51, %v344_v47  ;;  %v2071_v54 = vmul.f32 %v810_v52, %v343_v48  ;;  %1124 = vperm.xlu1 %2610, %v118_v49   ;;  %1119 = vperm.xlu0 %2609, %v117_v50   ;;  %v360_v47 = vld [vmem:[%s5508_s1 + $0x1e8] sm:$0xff]  ;;  %v359_v48 = vld [vmem:[%s5508_s1 + $0x1e0] sm:$0xff]  ;;  %v134_v49 = vld [vmem:[%s5507_s0 + $0x3d8] sm:$0xff] }
  0xd7   :  { %v133_v50 = vld [vmem:[%s5507_s0 + $0x3d0] sm:$0xff] }
  0xd8   :  { %2361 = vst.msk [vmem:[%s5509_s2 + $0x168] sm:$0xff] %vm2315_vm0, %v2072_v53  ;;  %2360 = vst.msk [vmem:[%s5509_s2 + $0x160] sm:$0xff] %vm2315_vm0, %v2071_v54 }
  0xd9   :  { %v825_v59 = vpop.permute.xlu1 %824  ;;  %v820_v60 = vpop.permute.xlu0 %819 }
  0xda   :  { %v2074_v61 = vmul.f32 %v825_v59, %v346_v55  ;;  %v2073_v62 = vmul.f32 %v820_v60, %v345_v56  ;;  %1134 = vperm.xlu1 %2610, %v120_v57   ;;  %1129 = vperm.xlu0 %2609, %v119_v58   ;;  %v362_v55 = vld [vmem:[%s5508_s1 + $0x1f8] sm:$0xff]  ;;  %v361_v56 = vld [vmem:[%s5508_s1 + $0x1f0] sm:$0xff]  ;;  %v136_v57 = vld [vmem:[%s5507_s0 + $0x3e8] sm:$0xff] }
  0xdb   :  { %v135_v58 = vld [vmem:[%s5507_s0 + $0x3e0] sm:$0xff] }
  0xdc   :  { %2363 = vst.msk [vmem:[%s5509_s2 + $0x178] sm:$0xff] %vm2315_vm0, %v2074_v61  ;;  %2362 = vst.msk [vmem:[%s5509_s2 + $0x170] sm:$0xff] %vm2315_vm0, %v2073_v62 }
  0xdd   :  { %v835_v3 = vpop.permute.xlu1 %834  ;;  %v830_v4 = vpop.permute.xlu0 %829 }
  0xde   :  { %v2076_v5 = vmul.f32 %v835_v3, %v348_v63  ;;  %v2075_v6 = vmul.f32 %v830_v4, %v347_v0  ;;  %1144 = vperm.xlu1 %2610, %v122_v1   ;;  %1139 = vperm.xlu0 %2609, %v121_v2   ;;  %v364_v63 = vld [vmem:[%s5508_s1 + $0x208] sm:$0xff]  ;;  %v363_v0 = vld [vmem:[%s5508_s1 + $0x200] sm:$0xff]  ;;  %v138_v1 = vld [vmem:[%s5507_s0 + $0x3f8] sm:$0xff] }
  0xdf   :  { %v137_v2 = vld [vmem:[%s5507_s0 + $0x3f0] sm:$0xff] }
  0xe0   :  { %2365 = vst.msk [vmem:[%s5509_s2 + $0x188] sm:$0xff] %vm2315_vm0, %v2076_v5  ;;  %2364 = vst.msk [vmem:[%s5509_s2 + $0x180] sm:$0xff] %vm2315_vm0, %v2075_v6 }
  0xe1   :  { %v845_v11 = vpop.permute.xlu1 %844  ;;  %v840_v12 = vpop.permute.xlu0 %839 }
  0xe2   :  { %v2078_v13 = vmul.f32 %v845_v11, %v350_v7  ;;  %v2077_v14 = vmul.f32 %v840_v12, %v349_v8  ;;  %1154 = vperm.xlu1 %2610, %v124_v9   ;;  %1149 = vperm.xlu0 %2609, %v123_v10   ;;  %v366_v7 = vld [vmem:[%s5508_s1 + $0x218] sm:$0xff]  ;;  %v365_v8 = vld [vmem:[%s5508_s1 + $0x210] sm:$0xff]  ;;  %v140_v9 = vld [vmem:[%s5507_s0 + $0x408] sm:$0xff] }
  0xe3   :  { %v139_v10 = vld [vmem:[%s5507_s0 + $0x400] sm:$0xff] }
  0xe4   :  { %2367 = vst.msk [vmem:[%s5509_s2 + $0x198] sm:$0xff] %vm2315_vm0, %v2078_v13  ;;  %2366 = vst.msk [vmem:[%s5509_s2 + $0x190] sm:$0xff] %vm2315_vm0, %v2077_v14 }
  0xe5   :  { %v855_v19 = vpop.permute.xlu1 %854  ;;  %v850_v20 = vpop.permute.xlu0 %849 }
  0xe6   :  { %v2080_v21 = vmul.f32 %v855_v19, %v352_v15  ;;  %v2079_v22 = vmul.f32 %v850_v20, %v351_v16  ;;  %1164 = vperm.xlu1 %2610, %v126_v17   ;;  %1159 = vperm.xlu0 %2609, %v125_v18   ;;  %v368_v15 = vld [vmem:[%s5508_s1 + $0x228] sm:$0xff]  ;;  %v367_v16 = vld [vmem:[%s5508_s1 + $0x220] sm:$0xff]  ;;  %v142_v17 = vld [vmem:[%s5507_s0 + $0x418] sm:$0xff] }
  0xe7   :  { %v141_v18 = vld [vmem:[%s5507_s0 + $0x410] sm:$0xff] }
  0xe8   :  { %2369 = vst.msk [vmem:[%s5509_s2 + $0x1a8] sm:$0xff] %vm2315_vm0, %v2080_v21  ;;  %2368 = vst.msk [vmem:[%s5509_s2 + $0x1a0] sm:$0xff] %vm2315_vm0, %v2079_v22 }
  0xe9   :  { %v865_v27 = vpop.permute.xlu1 %864  ;;  %v860_v28 = vpop.permute.xlu0 %859 }
  0xea   :  { %v2082_v29 = vmul.f32 %v865_v27, %v354_v23  ;;  %v2081_v30 = vmul.f32 %v860_v28, %v353_v24  ;;  %1174 = vperm.xlu1 %2610, %v128_v25   ;;  %1169 = vperm.xlu0 %2609, %v127_v26   ;;  %v370_v23 = vld [vmem:[%s5508_s1 + $0x238] sm:$0xff]  ;;  %v369_v24 = vld [vmem:[%s5508_s1 + $0x230] sm:$0xff]  ;;  %v144_v25 = vld [vmem:[%s5507_s0 + $0x428] sm:$0xff] }
  0xeb   :  { %v143_v26 = vld [vmem:[%s5507_s0 + $0x420] sm:$0xff] }
  0xec   :  { %2371 = vst.msk [vmem:[%s5509_s2 + $0x1b8] sm:$0xff] %vm2315_vm0, %v2082_v29  ;;  %2370 = vst.msk [vmem:[%s5509_s2 + $0x1b0] sm:$0xff] %vm2315_vm0, %v2081_v30 }
  0xed   :  { %v875_v35 = vpop.permute.xlu1 %874  ;;  %v870_v36 = vpop.permute.xlu0 %869 }
  0xee   :  { %v2084_v37 = vmul.f32 %v875_v35, %v356_v31  ;;  %v2083_v38 = vmul.f32 %v870_v36, %v355_v32  ;;  %1184 = vperm.xlu1 %2610, %v130_v33   ;;  %1179 = vperm.xlu0 %2609, %v129_v34   ;;  %v372_v31 = vld [vmem:[%s5508_s1 + $0x248] sm:$0xff]  ;;  %v371_v32 = vld [vmem:[%s5508_s1 + $0x240] sm:$0xff]  ;;  %v146_v33 = vld [vmem:[%s5507_s0 + $0x438] sm:$0xff] }
  0xef   :  { %v145_v34 = vld [vmem:[%s5507_s0 + $0x430] sm:$0xff] }
  0xf0   :  { %2373 = vst.msk [vmem:[%s5509_s2 + $0x1c8] sm:$0xff] %vm2315_vm0, %v2084_v37  ;;  %2372 = vst.msk [vmem:[%s5509_s2 + $0x1c0] sm:$0xff] %vm2315_vm0, %v2083_v38 }
  0xf1   :  { %v885_v43 = vpop.permute.xlu1 %884  ;;  %v880_v44 = vpop.permute.xlu0 %879 }
  0xf2   :  { %v2086_v45 = vmul.f32 %v885_v43, %v358_v39  ;;  %v2085_v46 = vmul.f32 %v880_v44, %v357_v40  ;;  %1194 = vperm.xlu1 %2610, %v132_v41   ;;  %1189 = vperm.xlu0 %2609, %v131_v42   ;;  %v374_v39 = vld [vmem:[%s5508_s1 + $0x258] sm:$0xff]  ;;  %v373_v40 = vld [vmem:[%s5508_s1 + $0x250] sm:$0xff]  ;;  %v148_v41 = vld [vmem:[%s5507_s0 + $0x448] sm:$0xff] }
  0xf3   :  { %v147_v42 = vld [vmem:[%s5507_s0 + $0x440] sm:$0xff] }
  0xf4   :  { %2375 = vst.msk [vmem:[%s5509_s2 + $0x1d8] sm:$0xff] %vm2315_vm0, %v2086_v45  ;;  %2374 = vst.msk [vmem:[%s5509_s2 + $0x1d0] sm:$0xff] %vm2315_vm0, %v2085_v46 }
  0xf5   :  { %v895_v51 = vpop.permute.xlu1 %894  ;;  %v890_v52 = vpop.permute.xlu0 %889 }
  0xf6   :  { %v2088_v53 = vmul.f32 %v895_v51, %v360_v47  ;;  %v2087_v54 = vmul.f32 %v890_v52, %v359_v48  ;;  %1204 = vperm.xlu1 %2610, %v134_v49   ;;  %1199 = vperm.xlu0 %2609, %v133_v50   ;;  %v376_v47 = vld [vmem:[%s5508_s1 + $0x268] sm:$0xff]  ;;  %v375_v48 = vld [vmem:[%s5508_s1 + $0x260] sm:$0xff]  ;;  %v150_v49 = vld [vmem:[%s5507_s0 + $0x458] sm:$0xff] }
  0xf7   :  { %v149_v50 = vld [vmem:[%s5507_s0 + $0x450] sm:$0xff] }
  0xf8   :  { %2377 = vst.msk [vmem:[%s5509_s2 + $0x1e8] sm:$0xff] %vm2315_vm0, %v2088_v53  ;;  %2376 = vst.msk [vmem:[%s5509_s2 + $0x1e0] sm:$0xff] %vm2315_vm0, %v2087_v54 }
  0xf9   :  { %v905_v59 = vpop.permute.xlu1 %904  ;;  %v900_v60 = vpop.permute.xlu0 %899 }
  0xfa   :  { %v2090_v61 = vmul.f32 %v905_v59, %v362_v55  ;;  %v2089_v62 = vmul.f32 %v900_v60, %v361_v56  ;;  %1214 = vperm.xlu1 %2610, %v136_v57   ;;  %1209 = vperm.xlu0 %2609, %v135_v58   ;;  %v378_v55 = vld [vmem:[%s5508_s1 + $0x278] sm:$0xff]  ;;  %v377_v56 = vld [vmem:[%s5508_s1 + $0x270] sm:$0xff]  ;;  %v152_v57 = vld [vmem:[%s5507_s0 + $0x468] sm:$0xff] }
  0xfb   :  { %v151_v58 = vld [vmem:[%s5507_s0 + $0x460] sm:$0xff] }
  0xfc   :  { %2379 = vst.msk [vmem:[%s5509_s2 + $0x1f8] sm:$0xff] %vm2315_vm0, %v2090_v61  ;;  %2378 = vst.msk [vmem:[%s5509_s2 + $0x1f0] sm:$0xff] %vm2315_vm0, %v2089_v62 }
  0xfd   :  { %v915_v3 = vpop.permute.xlu1 %914  ;;  %v910_v4 = vpop.permute.xlu0 %909 }
  0xfe   :  { %v2092_v5 = vmul.f32 %v915_v3, %v364_v63  ;;  %v2091_v6 = vmul.f32 %v910_v4, %v363_v0  ;;  %1224 = vperm.xlu1 %2610, %v138_v1   ;;  %1219 = vperm.xlu0 %2609, %v137_v2   ;;  %v380_v63 = vld [vmem:[%s5508_s1 + $0x288] sm:$0xff]  ;;  %v379_v0 = vld [vmem:[%s5508_s1 + $0x280] sm:$0xff]  ;;  %v154_v1 = vld [vmem:[%s5507_s0 + $0x478] sm:$0xff] }
  0xff   :  { %v153_v2 = vld [vmem:[%s5507_s0 + $0x470] sm:$0xff] }
 0x100   :  { %2381 = vst.msk [vmem:[%s5509_s2 + $0x208] sm:$0xff] %vm2315_vm0, %v2092_v5  ;;  %2380 = vst.msk [vmem:[%s5509_s2 + $0x200] sm:$0xff] %vm2315_vm0, %v2091_v6 }
 0x101   :  { %v925_v11 = vpop.permute.xlu1 %924  ;;  %v920_v12 = vpop.permute.xlu0 %919 }
 0x102   :  { %v2094_v13 = vmul.f32 %v925_v11, %v366_v7  ;;  %v2093_v14 = vmul.f32 %v920_v12, %v365_v8  ;;  %1234 = vperm.xlu1 %2610, %v140_v9   ;;  %1229 = vperm.xlu0 %2609, %v139_v10   ;;  %v382_v7 = vld [vmem:[%s5508_s1 + $0x298] sm:$0xff]  ;;  %v381_v8 = vld [vmem:[%s5508_s1 + $0x290] sm:$0xff]  ;;  %v156_v9 = vld [vmem:[%s5507_s0 + $0x488] sm:$0xff] }
 0x103   :  { %v155_v10 = vld [vmem:[%s5507_s0 + $0x480] sm:$0xff] }
 0x104   :  { %2383 = vst.msk [vmem:[%s5509_s2 + $0x218] sm:$0xff] %vm2315_vm0, %v2094_v13  ;;  %2382 = vst.msk [vmem:[%s5509_s2 + $0x210] sm:$0xff] %vm2315_vm0, %v2093_v14 }
 0x105   :  { %v935_v19 = vpop.permute.xlu1 %934  ;;  %v930_v20 = vpop.permute.xlu0 %929 }
 0x106   :  { %v2096_v21 = vmul.f32 %v935_v19, %v368_v15  ;;  %v2095_v22 = vmul.f32 %v930_v20, %v367_v16  ;;  %1244 = vperm.xlu1 %2610, %v142_v17   ;;  %1239 = vperm.xlu0 %2609, %v141_v18   ;;  %v384_v15 = vld [vmem:[%s5508_s1 + $0x2a8] sm:$0xff]  ;;  %v383_v16 = vld [vmem:[%s5508_s1 + $0x2a0] sm:$0xff]  ;;  %v158_v17 = vld [vmem:[%s5507_s0 + $0x498] sm:$0xff] }
 0x107   :  { %v157_v18 = vld [vmem:[%s5507_s0 + $0x490] sm:$0xff] }
 0x108   :  { %2385 = vst.msk [vmem:[%s5509_s2 + $0x228] sm:$0xff] %vm2315_vm0, %v2096_v21  ;;  %2384 = vst.msk [vmem:[%s5509_s2 + $0x220] sm:$0xff] %vm2315_vm0, %v2095_v22 }
 0x109   :  { %v945_v27 = vpop.permute.xlu1 %944  ;;  %v940_v28 = vpop.permute.xlu0 %939 }
 0x10a   :  { %v2098_v29 = vmul.f32 %v945_v27, %v370_v23  ;;  %v2097_v30 = vmul.f32 %v940_v28, %v369_v24  ;;  %1254 = vperm.xlu1 %2610, %v144_v25   ;;  %1249 = vperm.xlu0 %2609, %v143_v26   ;;  %v386_v23 = vld [vmem:[%s5508_s1 + $0x2b8] sm:$0xff]  ;;  %v385_v24 = vld [vmem:[%s5508_s1 + $0x2b0] sm:$0xff]  ;;  %v160_v25 = vld [vmem:[%s5507_s0 + $0x4a8] sm:$0xff] }
 0x10b   :  { %v159_v26 = vld [vmem:[%s5507_s0 + $0x4a0] sm:$0xff] }
 0x10c   :  { %2387 = vst.msk [vmem:[%s5509_s2 + $0x238] sm:$0xff] %vm2315_vm0, %v2098_v29  ;;  %2386 = vst.msk [vmem:[%s5509_s2 + $0x230] sm:$0xff] %vm2315_vm0, %v2097_v30 }
 0x10d   :  { %v955_v35 = vpop.permute.xlu1 %954  ;;  %v950_v36 = vpop.permute.xlu0 %949 }
 0x10e   :  { %v2100_v37 = vmul.f32 %v955_v35, %v372_v31  ;;  %v2099_v38 = vmul.f32 %v950_v36, %v371_v32  ;;  %1264 = vperm.xlu1 %2610, %v146_v33   ;;  %1259 = vperm.xlu0 %2609, %v145_v34   ;;  %v388_v31 = vld [vmem:[%s5508_s1 + $0x2c8] sm:$0xff]  ;;  %v387_v32 = vld [vmem:[%s5508_s1 + $0x2c0] sm:$0xff]  ;;  %v162_v33 = vld [vmem:[%s5507_s0 + $0x4b8] sm:$0xff] }
 0x10f   :  { %v161_v34 = vld [vmem:[%s5507_s0 + $0x4b0] sm:$0xff] }
 0x110   :  { %2389 = vst.msk [vmem:[%s5509_s2 + $0x248] sm:$0xff] %vm2315_vm0, %v2100_v37  ;;  %2388 = vst.msk [vmem:[%s5509_s2 + $0x240] sm:$0xff] %vm2315_vm0, %v2099_v38 }
 0x111   :  { %v965_v43 = vpop.permute.xlu1 %964  ;;  %v960_v44 = vpop.permute.xlu0 %959 }
 0x112   :  { %v2102_v45 = vmul.f32 %v965_v43, %v374_v39  ;;  %v2101_v46 = vmul.f32 %v960_v44, %v373_v40  ;;  %1274 = vperm.xlu1 %2610, %v148_v41   ;;  %1269 = vperm.xlu0 %2609, %v147_v42   ;;  %v390_v39 = vld [vmem:[%s5508_s1 + $0x2d8] sm:$0xff]  ;;  %v389_v40 = vld [vmem:[%s5508_s1 + $0x2d0] sm:$0xff]  ;;  %v164_v41 = vld [vmem:[%s5507_s0 + $0x4c8] sm:$0xff] }
 0x113   :  { %v163_v42 = vld [vmem:[%s5507_s0 + $0x4c0] sm:$0xff] }
 0x114   :  { %2391 = vst.msk [vmem:[%s5509_s2 + $0x258] sm:$0xff] %vm2315_vm0, %v2102_v45  ;;  %2390 = vst.msk [vmem:[%s5509_s2 + $0x250] sm:$0xff] %vm2315_vm0, %v2101_v46 }
 0x115   :  { %v975_v51 = vpop.permute.xlu1 %974  ;;  %v970_v52 = vpop.permute.xlu0 %969 }
 0x116   :  { %v2104_v53 = vmul.f32 %v975_v51, %v376_v47  ;;  %v2103_v54 = vmul.f32 %v970_v52, %v375_v48  ;;  %1284 = vperm.xlu1 %2610, %v150_v49   ;;  %1279 = vperm.xlu0 %2609, %v149_v50   ;;  %v392_v47 = vld [vmem:[%s5508_s1 + $0x2e8] sm:$0xff]  ;;  %v391_v48 = vld [vmem:[%s5508_s1 + $0x2e0] sm:$0xff]  ;;  %v166_v49 = vld [vmem:[%s5507_s0 + $0x4d8] sm:$0xff] }
 0x117   :  { %v165_v50 = vld [vmem:[%s5507_s0 + $0x4d0] sm:$0xff] }
 0x118   :  { %2393 = vst.msk [vmem:[%s5509_s2 + $0x268] sm:$0xff] %vm2315_vm0, %v2104_v53  ;;  %2392 = vst.msk [vmem:[%s5509_s2 + $0x260] sm:$0xff] %vm2315_vm0, %v2103_v54 }
 0x119   :  { %v985_v59 = vpop.permute.xlu1 %984  ;;  %v980_v60 = vpop.permute.xlu0 %979 }
 0x11a   :  { %v2106_v61 = vmul.f32 %v985_v59, %v378_v55  ;;  %v2105_v62 = vmul.f32 %v980_v60, %v377_v56  ;;  %1294 = vperm.xlu1 %2610, %v152_v57   ;;  %1289 = vperm.xlu0 %2609, %v151_v58   ;;  %v394_v55 = vld [vmem:[%s5508_s1 + $0x2f8] sm:$0xff]  ;;  %v393_v56 = vld [vmem:[%s5508_s1 + $0x2f0] sm:$0xff]  ;;  %v168_v57 = vld [vmem:[%s5507_s0 + $0x4e8] sm:$0xff] }
 0x11b   :  { %v167_v58 = vld [vmem:[%s5507_s0 + $0x4e0] sm:$0xff] }
 0x11c   :  { %2395 = vst.msk [vmem:[%s5509_s2 + $0x278] sm:$0xff] %vm2315_vm0, %v2106_v61  ;;  %2394 = vst.msk [vmem:[%s5509_s2 + $0x270] sm:$0xff] %vm2315_vm0, %v2105_v62 }
 0x11d   :  { %v995_v3 = vpop.permute.xlu1 %994  ;;  %v990_v4 = vpop.permute.xlu0 %989 }
 0x11e   :  { %v2108_v5 = vmul.f32 %v995_v3, %v380_v63  ;;  %v2107_v6 = vmul.f32 %v990_v4, %v379_v0  ;;  %1304 = vperm.xlu1 %2610, %v154_v1   ;;  %1299 = vperm.xlu0 %2609, %v153_v2   ;;  %v396_v63 = vld [vmem:[%s5508_s1 + $0x308] sm:$0xff]  ;;  %v395_v0 = vld [vmem:[%s5508_s1 + $0x300] sm:$0xff]  ;;  %v170_v1 = vld [vmem:[%s5507_s0 + $0x4f8] sm:$0xff] }
 0x11f   :  { %v169_v2 = vld [vmem:[%s5507_s0 + $0x4f0] sm:$0xff] }
 0x120   :  { %2397 = vst.msk [vmem:[%s5509_s2 + $0x288] sm:$0xff] %vm2315_vm0, %v2108_v5  ;;  %2396 = vst.msk [vmem:[%s5509_s2 + $0x280] sm:$0xff] %vm2315_vm0, %v2107_v6 }
 0x121   :  { %v1005_v11 = vpop.permute.xlu1 %1004  ;;  %v1000_v12 = vpop.permute.xlu0 %999 }
 0x122   :  { %v2110_v13 = vmul.f32 %v1005_v11, %v382_v7  ;;  %v2109_v14 = vmul.f32 %v1000_v12, %v381_v8  ;;  %1314 = vperm.xlu1 %2610, %v156_v9   ;;  %1309 = vperm.xlu0 %2609, %v155_v10   ;;  %v398_v7 = vld [vmem:[%s5508_s1 + $0x318] sm:$0xff]  ;;  %v397_v8 = vld [vmem:[%s5508_s1 + $0x310] sm:$0xff]  ;;  %v172_v9 = vld [vmem:[%s5507_s0 + $0x508] sm:$0xff] }
 0x123   :  { %v171_v10 = vld [vmem:[%s5507_s0 + $0x500] sm:$0xff] }
 0x124   :  { %2399 = vst.msk [vmem:[%s5509_s2 + $0x298] sm:$0xff] %vm2315_vm0, %v2110_v13  ;;  %2398 = vst.msk [vmem:[%s5509_s2 + $0x290] sm:$0xff] %vm2315_vm0, %v2109_v14 }
 0x125   :  { %v1015_v19 = vpop.permute.xlu1 %1014  ;;  %v1010_v20 = vpop.permute.xlu0 %1009 }
 0x126   :  { %v2112_v21 = vmul.f32 %v1015_v19, %v384_v15  ;;  %v2111_v22 = vmul.f32 %v1010_v20, %v383_v16  ;;  %1324 = vperm.xlu1 %2610, %v158_v17   ;;  %1319 = vperm.xlu0 %2609, %v157_v18   ;;  %v400_v15 = vld [vmem:[%s5508_s1 + $0x328] sm:$0xff]  ;;  %v399_v16 = vld [vmem:[%s5508_s1 + $0x320] sm:$0xff]  ;;  %v174_v17 = vld [vmem:[%s5507_s0 + $0x518] sm:$0xff] }
 0x127   :  { %v173_v18 = vld [vmem:[%s5507_s0 + $0x510] sm:$0xff] }
 0x128   :  { %2401 = vst.msk [vmem:[%s5509_s2 + $0x2a8] sm:$0xff] %vm2315_vm0, %v2112_v21  ;;  %2400 = vst.msk [vmem:[%s5509_s2 + $0x2a0] sm:$0xff] %vm2315_vm0, %v2111_v22 }
 0x129   :  { %v1025_v27 = vpop.permute.xlu1 %1024  ;;  %v1020_v28 = vpop.permute.xlu0 %1019 }
 0x12a   :  { %v2114_v29 = vmul.f32 %v1025_v27, %v386_v23  ;;  %v2113_v30 = vmul.f32 %v1020_v28, %v385_v24  ;;  %1334 = vperm.xlu1 %2610, %v160_v25   ;;  %1329 = vperm.xlu0 %2609, %v159_v26   ;;  %v402_v23 = vld [vmem:[%s5508_s1 + $0x338] sm:$0xff]  ;;  %v401_v24 = vld [vmem:[%s5508_s1 + $0x330] sm:$0xff]  ;;  %v176_v25 = vld [vmem:[%s5507_s0 + $0x528] sm:$0xff] }
 0x12b   :  { %v175_v26 = vld [vmem:[%s5507_s0 + $0x520] sm:$0xff] }
 0x12c   :  { %2403 = vst.msk [vmem:[%s5509_s2 + $0x2b8] sm:$0xff] %vm2315_vm0, %v2114_v29  ;;  %2402 = vst.msk [vmem:[%s5509_s2 + $0x2b0] sm:$0xff] %vm2315_vm0, %v2113_v30 }
 0x12d   :  { %v1035_v35 = vpop.permute.xlu1 %1034  ;;  %v1030_v36 = vpop.permute.xlu0 %1029 }
 0x12e   :  { %v2116_v37 = vmul.f32 %v1035_v35, %v388_v31  ;;  %v2115_v38 = vmul.f32 %v1030_v36, %v387_v32  ;;  %1344 = vperm.xlu1 %2610, %v162_v33   ;;  %1339 = vperm.xlu0 %2609, %v161_v34   ;;  %v404_v31 = vld [vmem:[%s5508_s1 + $0x348] sm:$0xff]  ;;  %v403_v32 = vld [vmem:[%s5508_s1 + $0x340] sm:$0xff]  ;;  %v178_v33 = vld [vmem:[%s5507_s0 + $0x538] sm:$0xff] }
 0x12f   :  { %v177_v34 = vld [vmem:[%s5507_s0 + $0x530] sm:$0xff] }
 0x130   :  { %2405 = vst.msk [vmem:[%s5509_s2 + $0x2c8] sm:$0xff] %vm2315_vm0, %v2116_v37  ;;  %2404 = vst.msk [vmem:[%s5509_s2 + $0x2c0] sm:$0xff] %vm2315_vm0, %v2115_v38 }
 0x131   :  { %v1045_v43 = vpop.permute.xlu1 %1044  ;;  %v1040_v44 = vpop.permute.xlu0 %1039 }
 0x132   :  { %v2118_v45 = vmul.f32 %v1045_v43, %v390_v39  ;;  %v2117_v46 = vmul.f32 %v1040_v44, %v389_v40  ;;  %1354 = vperm.xlu1 %2610, %v164_v41   ;;  %1349 = vperm.xlu0 %2609, %v163_v42   ;;  %v406_v39 = vld [vmem:[%s5508_s1 + $0x358] sm:$0xff]  ;;  %v405_v40 = vld [vmem:[%s5508_s1 + $0x350] sm:$0xff]  ;;  %v180_v41 = vld [vmem:[%s5507_s0 + $0x548] sm:$0xff] }
 0x133   :  { %v179_v42 = vld [vmem:[%s5507_s0 + $0x540] sm:$0xff] }
 0x134   :  { %2407 = vst.msk [vmem:[%s5509_s2 + $0x2d8] sm:$0xff] %vm2315_vm0, %v2118_v45  ;;  %2406 = vst.msk [vmem:[%s5509_s2 + $0x2d0] sm:$0xff] %vm2315_vm0, %v2117_v46 }
 0x135   :  { %v1055_v51 = vpop.permute.xlu1 %1054  ;;  %v1050_v52 = vpop.permute.xlu0 %1049 }
 0x136   :  { %v2120_v53 = vmul.f32 %v1055_v51, %v392_v47  ;;  %v2119_v54 = vmul.f32 %v1050_v52, %v391_v48  ;;  %1364 = vperm.xlu1 %2610, %v166_v49   ;;  %1359 = vperm.xlu0 %2609, %v165_v50   ;;  %v408_v47 = vld [vmem:[%s5508_s1 + $0x368] sm:$0xff]  ;;  %v407_v48 = vld [vmem:[%s5508_s1 + $0x360] sm:$0xff]  ;;  %v182_v49 = vld [vmem:[%s5507_s0 + $0x558] sm:$0xff] }
 0x137   :  { %v181_v50 = vld [vmem:[%s5507_s0 + $0x550] sm:$0xff] }
 0x138   :  { %2409 = vst.msk [vmem:[%s5509_s2 + $0x2e8] sm:$0xff] %vm2315_vm0, %v2120_v53  ;;  %2408 = vst.msk [vmem:[%s5509_s2 + $0x2e0] sm:$0xff] %vm2315_vm0, %v2119_v54 }
 0x139   :  { %v1065_v59 = vpop.permute.xlu1 %1064  ;;  %v1060_v60 = vpop.permute.xlu0 %1059 }
 0x13a   :  { %v2122_v61 = vmul.f32 %v1065_v59, %v394_v55  ;;  %v2121_v62 = vmul.f32 %v1060_v60, %v393_v56  ;;  %1374 = vperm.xlu1 %2610, %v168_v57   ;;  %1369 = vperm.xlu0 %2609, %v167_v58   ;;  %v410_v55 = vld [vmem:[%s5508_s1 + $0x378] sm:$0xff]  ;;  %v409_v56 = vld [vmem:[%s5508_s1 + $0x370] sm:$0xff]  ;;  %v184_v57 = vld [vmem:[%s5507_s0 + $0x568] sm:$0xff] }
 0x13b   :  { %v183_v58 = vld [vmem:[%s5507_s0 + $0x560] sm:$0xff] }
 0x13c   :  { %2411 = vst.msk [vmem:[%s5509_s2 + $0x2f8] sm:$0xff] %vm2315_vm0, %v2122_v61  ;;  %2410 = vst.msk [vmem:[%s5509_s2 + $0x2f0] sm:$0xff] %vm2315_vm0, %v2121_v62 }
 0x13d   :  { %v1075_v3 = vpop.permute.xlu1 %1074  ;;  %v1070_v4 = vpop.permute.xlu0 %1069 }
 0x13e   :  { %v2124_v5 = vmul.f32 %v1075_v3, %v396_v63  ;;  %v2123_v6 = vmul.f32 %v1070_v4, %v395_v0  ;;  %1384 = vperm.xlu1 %2610, %v170_v1   ;;  %1379 = vperm.xlu0 %2609, %v169_v2   ;;  %v412_v63 = vld [vmem:[%s5508_s1 + $0x388] sm:$0xff]  ;;  %v411_v0 = vld [vmem:[%s5508_s1 + $0x380] sm:$0xff]  ;;  %v186_v1 = vld [vmem:[%s5507_s0 + $0x578] sm:$0xff] }
 0x13f   :  { %v185_v2 = vld [vmem:[%s5507_s0 + $0x570] sm:$0xff] }
 0x140   :  { %2413 = vst.msk [vmem:[%s5509_s2 + $0x308] sm:$0xff] %vm2315_vm0, %v2124_v5  ;;  %2412 = vst.msk [vmem:[%s5509_s2 + $0x300] sm:$0xff] %vm2315_vm0, %v2123_v6 }
 0x141   :  { %v1085_v11 = vpop.permute.xlu1 %1084  ;;  %v1080_v12 = vpop.permute.xlu0 %1079 }
 0x142   :  { %v2126_v13 = vmul.f32 %v1085_v11, %v398_v7  ;;  %v2125_v14 = vmul.f32 %v1080_v12, %v397_v8  ;;  %1394 = vperm.xlu1 %2610, %v172_v9   ;;  %1389 = vperm.xlu0 %2609, %v171_v10   ;;  %v414_v7 = vld [vmem:[%s5508_s1 + $0x398] sm:$0xff]  ;;  %v413_v8 = vld [vmem:[%s5508_s1 + $0x390] sm:$0xff]  ;;  %v188_v9 = vld [vmem:[%s5507_s0 + $0x588] sm:$0xff] }
 0x143   :  { %v187_v10 = vld [vmem:[%s5507_s0 + $0x580] sm:$0xff] }
 0x144   :  { %2415 = vst.msk [vmem:[%s5509_s2 + $0x318] sm:$0xff] %vm2315_vm0, %v2126_v13  ;;  %2414 = vst.msk [vmem:[%s5509_s2 + $0x310] sm:$0xff] %vm2315_vm0, %v2125_v14 }
 0x145   :  { %v1095_v19 = vpop.permute.xlu1 %1094  ;;  %v1090_v20 = vpop.permute.xlu0 %1089 }
 0x146   :  { %v2128_v21 = vmul.f32 %v1095_v19, %v400_v15  ;;  %v2127_v22 = vmul.f32 %v1090_v20, %v399_v16  ;;  %1404 = vperm.xlu1 %2610, %v174_v17   ;;  %1399 = vperm.xlu0 %2609, %v173_v18   ;;  %v416_v15 = vld [vmem:[%s5508_s1 + $0x3a8] sm:$0xff]  ;;  %v415_v16 = vld [vmem:[%s5508_s1 + $0x3a0] sm:$0xff]  ;;  %v190_v17 = vld [vmem:[%s5507_s0 + $0x598] sm:$0xff] }
 0x147   :  { %v189_v18 = vld [vmem:[%s5507_s0 + $0x590] sm:$0xff] }
 0x148   :  { %2417 = vst.msk [vmem:[%s5509_s2 + $0x328] sm:$0xff] %vm2315_vm0, %v2128_v21  ;;  %2416 = vst.msk [vmem:[%s5509_s2 + $0x320] sm:$0xff] %vm2315_vm0, %v2127_v22 }
 0x149   :  { %v1105_v27 = vpop.permute.xlu1 %1104  ;;  %v1100_v28 = vpop.permute.xlu0 %1099 }
 0x14a   :  { %v2130_v29 = vmul.f32 %v1105_v27, %v402_v23  ;;  %v2129_v30 = vmul.f32 %v1100_v28, %v401_v24  ;;  %1414 = vperm.xlu1 %2610, %v176_v25   ;;  %1409 = vperm.xlu0 %2609, %v175_v26   ;;  %v418_v23 = vld [vmem:[%s5508_s1 + $0x3b8] sm:$0xff]  ;;  %v417_v24 = vld [vmem:[%s5508_s1 + $0x3b0] sm:$0xff]  ;;  %v192_v25 = vld [vmem:[%s5507_s0 + $0x5a8] sm:$0xff] }
 0x14b   :  { %v191_v26 = vld [vmem:[%s5507_s0 + $0x5a0] sm:$0xff] }
 0x14c   :  { %2419 = vst.msk [vmem:[%s5509_s2 + $0x338] sm:$0xff] %vm2315_vm0, %v2130_v29  ;;  %2418 = vst.msk [vmem:[%s5509_s2 + $0x330] sm:$0xff] %vm2315_vm0, %v2129_v30 }
 0x14d   :  { %v1115_v35 = vpop.permute.xlu1 %1114  ;;  %v1110_v36 = vpop.permute.xlu0 %1109 }
 0x14e   :  { %v2132_v37 = vmul.f32 %v1115_v35, %v404_v31  ;;  %v2131_v38 = vmul.f32 %v1110_v36, %v403_v32  ;;  %1424 = vperm.xlu1 %2610, %v178_v33   ;;  %1419 = vperm.xlu0 %2609, %v177_v34   ;;  %v420_v31 = vld [vmem:[%s5508_s1 + $0x3c8] sm:$0xff]  ;;  %v419_v32 = vld [vmem:[%s5508_s1 + $0x3c0] sm:$0xff]  ;;  %v194_v33 = vld [vmem:[%s5507_s0 + $0x5b8] sm:$0xff] }
 0x14f   :  { %v193_v34 = vld [vmem:[%s5507_s0 + $0x5b0] sm:$0xff] }
 0x150   :  { %2421 = vst.msk [vmem:[%s5509_s2 + $0x348] sm:$0xff] %vm2315_vm0, %v2132_v37  ;;  %2420 = vst.msk [vmem:[%s5509_s2 + $0x340] sm:$0xff] %vm2315_vm0, %v2131_v38 }
 0x151   :  { %v1125_v43 = vpop.permute.xlu1 %1124  ;;  %v1120_v44 = vpop.permute.xlu0 %1119 }
 0x152   :  { %v2134_v45 = vmul.f32 %v1125_v43, %v406_v39  ;;  %v2133_v46 = vmul.f32 %v1120_v44, %v405_v40  ;;  %1434 = vperm.xlu1 %2610, %v180_v41   ;;  %1429 = vperm.xlu0 %2609, %v179_v42   ;;  %v422_v39 = vld [vmem:[%s5508_s1 + $0x3d8] sm:$0xff]  ;;  %v421_v40 = vld [vmem:[%s5508_s1 + $0x3d0] sm:$0xff]  ;;  %v196_v41 = vld [vmem:[%s5507_s0 + $0x5c8] sm:$0xff] }
 0x153   :  { %v195_v42 = vld [vmem:[%s5507_s0 + $0x5c0] sm:$0xff] }
 0x154   :  { %2423 = vst.msk [vmem:[%s5509_s2 + $0x358] sm:$0xff] %vm2315_vm0, %v2134_v45  ;;  %2422 = vst.msk [vmem:[%s5509_s2 + $0x350] sm:$0xff] %vm2315_vm0, %v2133_v46 }
 0x155   :  { %v1135_v51 = vpop.permute.xlu1 %1134  ;;  %v1130_v52 = vpop.permute.xlu0 %1129 }
 0x156   :  { %v2136_v53 = vmul.f32 %v1135_v51, %v408_v47  ;;  %v2135_v54 = vmul.f32 %v1130_v52, %v407_v48  ;;  %1444 = vperm.xlu1 %2610, %v182_v49   ;;  %1439 = vperm.xlu0 %2609, %v181_v50   ;;  %v424_v47 = vld [vmem:[%s5508_s1 + $0x3e8] sm:$0xff]  ;;  %v423_v48 = vld [vmem:[%s5508_s1 + $0x3e0] sm:$0xff]  ;;  %v198_v49 = vld [vmem:[%s5507_s0 + $0x5d8] sm:$0xff] }
 0x157   :  { %v197_v50 = vld [vmem:[%s5507_s0 + $0x5d0] sm:$0xff] }
 0x158   :  { %2425 = vst.msk [vmem:[%s5509_s2 + $0x368] sm:$0xff] %vm2315_vm0, %v2136_v53  ;;  %2424 = vst.msk [vmem:[%s5509_s2 + $0x360] sm:$0xff] %vm2315_vm0, %v2135_v54 }
 0x159   :  { %v1145_v59 = vpop.permute.xlu1 %1144  ;;  %v1140_v60 = vpop.permute.xlu0 %1139 }
 0x15a   :  { %v2138_v61 = vmul.f32 %v1145_v59, %v410_v55  ;;  %v2137_v62 = vmul.f32 %v1140_v60, %v409_v56  ;;  %1454 = vperm.xlu1 %2610, %v184_v57   ;;  %1449 = vperm.xlu0 %2609, %v183_v58   ;;  %v426_v55 = vld [vmem:[%s5508_s1 + $0x3f8] sm:$0xff]  ;;  %v425_v56 = vld [vmem:[%s5508_s1 + $0x3f0] sm:$0xff]  ;;  %v200_v57 = vld [vmem:[%s5507_s0 + $0x5e8] sm:$0xff] }
 0x15b   :  { %v199_v58 = vld [vmem:[%s5507_s0 + $0x5e0] sm:$0xff] }
 0x15c   :  { %2427 = vst.msk [vmem:[%s5509_s2 + $0x378] sm:$0xff] %vm2315_vm0, %v2138_v61  ;;  %2426 = vst.msk [vmem:[%s5509_s2 + $0x370] sm:$0xff] %vm2315_vm0, %v2137_v62 }
 0x15d   :  { %v1155_v3 = vpop.permute.xlu1 %1154  ;;  %v1150_v4 = vpop.permute.xlu0 %1149 }
 0x15e   :  { %v2140_v5 = vmul.f32 %v1155_v3, %v412_v63  ;;  %v2139_v6 = vmul.f32 %v1150_v4, %v411_v0  ;;  %1464 = vperm.xlu1 %2610, %v186_v1   ;;  %1459 = vperm.xlu0 %2609, %v185_v2   ;;  %v428_v63 = vld [vmem:[%s5508_s1 + $0x408] sm:$0xff]  ;;  %v427_v0 = vld [vmem:[%s5508_s1 + $0x400] sm:$0xff]  ;;  %v202_v1 = vld [vmem:[%s5507_s0 + $0x5f8] sm:$0xff] }
 0x15f   :  { %v201_v2 = vld [vmem:[%s5507_s0 + $0x5f0] sm:$0xff] }
 0x160   :  { %2429 = vst.msk [vmem:[%s5509_s2 + $0x388] sm:$0xff] %vm2315_vm0, %v2140_v5  ;;  %2428 = vst.msk [vmem:[%s5509_s2 + $0x380] sm:$0xff] %vm2315_vm0, %v2139_v6 }
 0x161   :  { %v1165_v11 = vpop.permute.xlu1 %1164  ;;  %v1160_v12 = vpop.permute.xlu0 %1159 }
 0x162   :  { %v2142_v13 = vmul.f32 %v1165_v11, %v414_v7  ;;  %v2141_v14 = vmul.f32 %v1160_v12, %v413_v8  ;;  %1474 = vperm.xlu1 %2610, %v188_v9   ;;  %1469 = vperm.xlu0 %2609, %v187_v10   ;;  %v430_v7 = vld [vmem:[%s5508_s1 + $0x418] sm:$0xff]  ;;  %v429_v8 = vld [vmem:[%s5508_s1 + $0x410] sm:$0xff]  ;;  %v204_v9 = vld [vmem:[%s5507_s0 + $0x608] sm:$0xff] }
 0x163   :  { %v203_v10 = vld [vmem:[%s5507_s0 + $0x600] sm:$0xff] }
 0x164   :  { %2431 = vst.msk [vmem:[%s5509_s2 + $0x398] sm:$0xff] %vm2315_vm0, %v2142_v13  ;;  %2430 = vst.msk [vmem:[%s5509_s2 + $0x390] sm:$0xff] %vm2315_vm0, %v2141_v14 }
 0x165   :  { %v1175_v19 = vpop.permute.xlu1 %1174  ;;  %v1170_v20 = vpop.permute.xlu0 %1169 }
 0x166   :  { %v2144_v21 = vmul.f32 %v1175_v19, %v416_v15  ;;  %v2143_v22 = vmul.f32 %v1170_v20, %v415_v16  ;;  %1484 = vperm.xlu1 %2610, %v190_v17   ;;  %1479 = vperm.xlu0 %2609, %v189_v18   ;;  %v432_v15 = vld [vmem:[%s5508_s1 + $0x428] sm:$0xff]  ;;  %v431_v16 = vld [vmem:[%s5508_s1 + $0x420] sm:$0xff]  ;;  %v206_v17 = vld [vmem:[%s5507_s0 + $0x618] sm:$0xff] }
 0x167   :  { %v205_v18 = vld [vmem:[%s5507_s0 + $0x610] sm:$0xff] }
 0x168   :  { %2433 = vst.msk [vmem:[%s5509_s2 + $0x3a8] sm:$0xff] %vm2315_vm0, %v2144_v21  ;;  %2432 = vst.msk [vmem:[%s5509_s2 + $0x3a0] sm:$0xff] %vm2315_vm0, %v2143_v22 }
 0x169   :  { %v1185_v27 = vpop.permute.xlu1 %1184  ;;  %v1180_v28 = vpop.permute.xlu0 %1179 }
 0x16a   :  { %v2146_v29 = vmul.f32 %v1185_v27, %v418_v23  ;;  %v2145_v30 = vmul.f32 %v1180_v28, %v417_v24  ;;  %1494 = vperm.xlu1 %2610, %v192_v25   ;;  %1489 = vperm.xlu0 %2609, %v191_v26   ;;  %v434_v23 = vld [vmem:[%s5508_s1 + $0x438] sm:$0xff]  ;;  %v433_v24 = vld [vmem:[%s5508_s1 + $0x430] sm:$0xff]  ;;  %v208_v25 = vld [vmem:[%s5507_s0 + $0x628] sm:$0xff] }
 0x16b   :  { %v207_v26 = vld [vmem:[%s5507_s0 + $0x620] sm:$0xff] }
 0x16c   :  { %2435 = vst.msk [vmem:[%s5509_s2 + $0x3b8] sm:$0xff] %vm2315_vm0, %v2146_v29  ;;  %2434 = vst.msk [vmem:[%s5509_s2 + $0x3b0] sm:$0xff] %vm2315_vm0, %v2145_v30 }
 0x16d   :  { %v1195_v35 = vpop.permute.xlu1 %1194  ;;  %v1190_v36 = vpop.permute.xlu0 %1189 }
 0x16e   :  { %v2148_v37 = vmul.f32 %v1195_v35, %v420_v31  ;;  %v2147_v38 = vmul.f32 %v1190_v36, %v419_v32  ;;  %1504 = vperm.xlu1 %2610, %v194_v33   ;;  %1499 = vperm.xlu0 %2609, %v193_v34   ;;  %v436_v31 = vld [vmem:[%s5508_s1 + $0x448] sm:$0xff]  ;;  %v435_v32 = vld [vmem:[%s5508_s1 + $0x440] sm:$0xff]  ;;  %v210_v33 = vld [vmem:[%s5507_s0 + $0x638] sm:$0xff] }
 0x16f   :  { %v209_v34 = vld [vmem:[%s5507_s0 + $0x630] sm:$0xff] }
 0x170   :  { %2437 = vst.msk [vmem:[%s5509_s2 + $0x3c8] sm:$0xff] %vm2315_vm0, %v2148_v37  ;;  %2436 = vst.msk [vmem:[%s5509_s2 + $0x3c0] sm:$0xff] %vm2315_vm0, %v2147_v38 }
 0x171   :  { %v1205_v43 = vpop.permute.xlu1 %1204  ;;  %v1200_v44 = vpop.permute.xlu0 %1199 }
 0x172   :  { %v2150_v45 = vmul.f32 %v1205_v43, %v422_v39  ;;  %v2149_v46 = vmul.f32 %v1200_v44, %v421_v40  ;;  %1514 = vperm.xlu1 %2610, %v196_v41   ;;  %1509 = vperm.xlu0 %2609, %v195_v42   ;;  %v438_v39 = vld [vmem:[%s5508_s1 + $0x458] sm:$0xff]  ;;  %v437_v40 = vld [vmem:[%s5508_s1 + $0x450] sm:$0xff]  ;;  %v212_v41 = vld [vmem:[%s5507_s0 + $0x648] sm:$0xff] }
 0x173   :  { %v211_v42 = vld [vmem:[%s5507_s0 + $0x640] sm:$0xff] }
 0x174   :  { %2439 = vst.msk [vmem:[%s5509_s2 + $0x3d8] sm:$0xff] %vm2315_vm0, %v2150_v45  ;;  %2438 = vst.msk [vmem:[%s5509_s2 + $0x3d0] sm:$0xff] %vm2315_vm0, %v2149_v46 }
 0x175   :  { %v1215_v51 = vpop.permute.xlu1 %1214  ;;  %v1210_v52 = vpop.permute.xlu0 %1209 }
 0x176   :  { %v2152_v53 = vmul.f32 %v1215_v51, %v424_v47  ;;  %v2151_v54 = vmul.f32 %v1210_v52, %v423_v48  ;;  %1524 = vperm.xlu1 %2610, %v198_v49   ;;  %1519 = vperm.xlu0 %2609, %v197_v50   ;;  %v440_v47 = vld [vmem:[%s5508_s1 + $0x468] sm:$0xff]  ;;  %v439_v48 = vld [vmem:[%s5508_s1 + $0x460] sm:$0xff]  ;;  %v214_v49 = vld [vmem:[%s5507_s0 + $0x658] sm:$0xff] }
 0x177   :  { %v213_v50 = vld [vmem:[%s5507_s0 + $0x650] sm:$0xff] }
 0x178   :  { %2441 = vst.msk [vmem:[%s5509_s2 + $0x3e8] sm:$0xff] %vm2315_vm0, %v2152_v53  ;;  %2440 = vst.msk [vmem:[%s5509_s2 + $0x3e0] sm:$0xff] %vm2315_vm0, %v2151_v54 }
 0x179   :  { %v1225_v59 = vpop.permute.xlu1 %1224  ;;  %v1220_v60 = vpop.permute.xlu0 %1219 }
 0x17a   :  { %v2154_v61 = vmul.f32 %v1225_v59, %v426_v55  ;;  %v2153_v62 = vmul.f32 %v1220_v60, %v425_v56  ;;  %1534 = vperm.xlu1 %2610, %v200_v57   ;;  %1529 = vperm.xlu0 %2609, %v199_v58   ;;  %v442_v55 = vld [vmem:[%s5508_s1 + $0x478] sm:$0xff]  ;;  %v441_v56 = vld [vmem:[%s5508_s1 + $0x470] sm:$0xff]  ;;  %v216_v57 = vld [vmem:[%s5507_s0 + $0x668] sm:$0xff] }
 0x17b   :  { %v215_v58 = vld [vmem:[%s5507_s0 + $0x660] sm:$0xff] }
 0x17c   :  { %2443 = vst.msk [vmem:[%s5509_s2 + $0x3f8] sm:$0xff] %vm2315_vm0, %v2154_v61  ;;  %2442 = vst.msk [vmem:[%s5509_s2 + $0x3f0] sm:$0xff] %vm2315_vm0, %v2153_v62 }
 0x17d   :  { %v1235_v3 = vpop.permute.xlu1 %1234  ;;  %v1230_v4 = vpop.permute.xlu0 %1229 }
 0x17e   :  { %v2156_v5 = vmul.f32 %v1235_v3, %v428_v63  ;;  %v2155_v6 = vmul.f32 %v1230_v4, %v427_v0  ;;  %1544 = vperm.xlu1 %2610, %v202_v1   ;;  %1539 = vperm.xlu0 %2609, %v201_v2   ;;  %v444_v63 = vld [vmem:[%s5508_s1 + $0x488] sm:$0xff]  ;;  %v443_v0 = vld [vmem:[%s5508_s1 + $0x480] sm:$0xff]  ;;  %v218_v1 = vld [vmem:[%s5507_s0 + $0x678] sm:$0xff] }
 0x17f   :  { %v217_v2 = vld [vmem:[%s5507_s0 + $0x670] sm:$0xff] }
 0x180   :  { %2445 = vst.msk [vmem:[%s5509_s2 + $0x408] sm:$0xff] %vm2315_vm0, %v2156_v5  ;;  %2444 = vst.msk [vmem:[%s5509_s2 + $0x400] sm:$0xff] %vm2315_vm0, %v2155_v6 }
 0x181   :  { %v1245_v11 = vpop.permute.xlu1 %1244  ;;  %v1240_v12 = vpop.permute.xlu0 %1239 }
 0x182   :  { %v2158_v13 = vmul.f32 %v1245_v11, %v430_v7  ;;  %v2157_v14 = vmul.f32 %v1240_v12, %v429_v8  ;;  %1554 = vperm.xlu1 %2610, %v204_v9   ;;  %1549 = vperm.xlu0 %2609, %v203_v10   ;;  %v446_v7 = vld [vmem:[%s5508_s1 + $0x498] sm:$0xff]  ;;  %v445_v8 = vld [vmem:[%s5508_s1 + $0x490] sm:$0xff]  ;;  %v220_v9 = vld [vmem:[%s5507_s0 + $0x688] sm:$0xff] }
 0x183   :  { %v219_v10 = vld [vmem:[%s5507_s0 + $0x680] sm:$0xff] }
 0x184   :  { %2447 = vst.msk [vmem:[%s5509_s2 + $0x418] sm:$0xff] %vm2315_vm0, %v2158_v13  ;;  %2446 = vst.msk [vmem:[%s5509_s2 + $0x410] sm:$0xff] %vm2315_vm0, %v2157_v14 }
 0x185   :  { %v1255_v19 = vpop.permute.xlu1 %1254  ;;  %v1250_v20 = vpop.permute.xlu0 %1249 }
 0x186   :  { %v2160_v21 = vmul.f32 %v1255_v19, %v432_v15  ;;  %v2159_v22 = vmul.f32 %v1250_v20, %v431_v16  ;;  %1564 = vperm.xlu1 %2610, %v206_v17   ;;  %1559 = vperm.xlu0 %2609, %v205_v18   ;;  %v448_v15 = vld [vmem:[%s5508_s1 + $0x4a8] sm:$0xff]  ;;  %v447_v16 = vld [vmem:[%s5508_s1 + $0x4a0] sm:$0xff]  ;;  %v222_v17 = vld [vmem:[%s5507_s0 + $0x698] sm:$0xff] }
 0x187   :  { %v221_v18 = vld [vmem:[%s5507_s0 + $0x690] sm:$0xff] }
 0x188   :  { %2449 = vst.msk [vmem:[%s5509_s2 + $0x428] sm:$0xff] %vm2315_vm0, %v2160_v21  ;;  %2448 = vst.msk [vmem:[%s5509_s2 + $0x420] sm:$0xff] %vm2315_vm0, %v2159_v22 }
 0x189   :  { %v1265_v27 = vpop.permute.xlu1 %1264  ;;  %v1260_v28 = vpop.permute.xlu0 %1259 }
 0x18a   :  { %v2162_v29 = vmul.f32 %v1265_v27, %v434_v23  ;;  %v2161_v30 = vmul.f32 %v1260_v28, %v433_v24  ;;  %1574 = vperm.xlu1 %2610, %v208_v25   ;;  %1569 = vperm.xlu0 %2609, %v207_v26   ;;  %v450_v23 = vld [vmem:[%s5508_s1 + $0x4b8] sm:$0xff]  ;;  %v449_v24 = vld [vmem:[%s5508_s1 + $0x4b0] sm:$0xff]  ;;  %v224_v25 = vld [vmem:[%s5507_s0 + $0x6a8] sm:$0xff] }
 0x18b   :  { %v223_v26 = vld [vmem:[%s5507_s0 + $0x6a0] sm:$0xff] }
 0x18c   :  { %2451 = vst.msk [vmem:[%s5509_s2 + $0x438] sm:$0xff] %vm2315_vm0, %v2162_v29  ;;  %2450 = vst.msk [vmem:[%s5509_s2 + $0x430] sm:$0xff] %vm2315_vm0, %v2161_v30 }
 0x18d   :  { %v1275_v35 = vpop.permute.xlu1 %1274  ;;  %v1270_v36 = vpop.permute.xlu0 %1269 }
 0x18e   :  { %v2164_v37 = vmul.f32 %v1275_v35, %v436_v31  ;;  %v2163_v38 = vmul.f32 %v1270_v36, %v435_v32  ;;  %1584 = vperm.xlu1 %2610, %v210_v33   ;;  %1579 = vperm.xlu0 %2609, %v209_v34   ;;  %v452_v31 = vld [vmem:[%s5508_s1 + $0x4c8] sm:$0xff]  ;;  %v451_v32 = vld [vmem:[%s5508_s1 + $0x4c0] sm:$0xff]  ;;  %v226_v33 = vld [vmem:[%s5507_s0 + $0x6b8] sm:$0xff] }
 0x18f   :  { %v225_v34 = vld [vmem:[%s5507_s0 + $0x6b0] sm:$0xff] }
 0x190   :  { %2453 = vst.msk [vmem:[%s5509_s2 + $0x448] sm:$0xff] %vm2315_vm0, %v2164_v37  ;;  %2452 = vst.msk [vmem:[%s5509_s2 + $0x440] sm:$0xff] %vm2315_vm0, %v2163_v38 }
 0x191   :  { %v1285_v43 = vpop.permute.xlu1 %1284  ;;  %v1280_v44 = vpop.permute.xlu0 %1279 }
 0x192   :  { %v2166_v45 = vmul.f32 %v1285_v43, %v438_v39  ;;  %v2165_v46 = vmul.f32 %v1280_v44, %v437_v40  ;;  %1594 = vperm.xlu1 %2610, %v212_v41   ;;  %1589 = vperm.xlu0 %2609, %v211_v42   ;;  %v454_v39 = vld [vmem:[%s5508_s1 + $0x4d8] sm:$0xff]  ;;  %v453_v40 = vld [vmem:[%s5508_s1 + $0x4d0] sm:$0xff]  ;;  %v228_v41 = vld [vmem:[%s5507_s0 + $0x6c8] sm:$0xff] }
 0x193   :  { %v227_v42 = vld [vmem:[%s5507_s0 + $0x6c0] sm:$0xff] }
 0x194   :  { %2455 = vst.msk [vmem:[%s5509_s2 + $0x458] sm:$0xff] %vm2315_vm0, %v2166_v45  ;;  %2454 = vst.msk [vmem:[%s5509_s2 + $0x450] sm:$0xff] %vm2315_vm0, %v2165_v46 }
 0x195   :  { %v1295_v51 = vpop.permute.xlu1 %1294  ;;  %v1290_v52 = vpop.permute.xlu0 %1289 }
 0x196   :  { %v2168_v53 = vmul.f32 %v1295_v51, %v440_v47  ;;  %v2167_v54 = vmul.f32 %v1290_v52, %v439_v48  ;;  %1604 = vperm.xlu1 %2610, %v214_v49   ;;  %1599 = vperm.xlu0 %2609, %v213_v50   ;;  %v456_v47 = vld [vmem:[%s5508_s1 + $0x4e8] sm:$0xff]  ;;  %v455_v48 = vld [vmem:[%s5508_s1 + $0x4e0] sm:$0xff]  ;;  %v230_v49 = vld [vmem:[%s5507_s0 + $0x6d8] sm:$0xff] }
 0x197   :  { %v229_v50 = vld [vmem:[%s5507_s0 + $0x6d0] sm:$0xff] }
 0x198   :  { %2457 = vst.msk [vmem:[%s5509_s2 + $0x468] sm:$0xff] %vm2315_vm0, %v2168_v53  ;;  %2456 = vst.msk [vmem:[%s5509_s2 + $0x460] sm:$0xff] %vm2315_vm0, %v2167_v54 }
 0x199   :  { %v1305_v59 = vpop.permute.xlu1 %1304  ;;  %v1300_v60 = vpop.permute.xlu0 %1299 }
 0x19a   :  { %v2170_v61 = vmul.f32 %v1305_v59, %v442_v55  ;;  %v2169_v62 = vmul.f32 %v1300_v60, %v441_v56  ;;  %1614 = vperm.xlu1 %2610, %v216_v57   ;;  %1609 = vperm.xlu0 %2609, %v215_v58   ;;  %v458_v55 = vld [vmem:[%s5508_s1 + $0x4f8] sm:$0xff]  ;;  %v457_v56 = vld [vmem:[%s5508_s1 + $0x4f0] sm:$0xff]  ;;  %v232_v57 = vld [vmem:[%s5507_s0 + $0x6e8] sm:$0xff] }
 0x19b   :  { %v231_v58 = vld [vmem:[%s5507_s0 + $0x6e0] sm:$0xff] }
 0x19c   :  { %2459 = vst.msk [vmem:[%s5509_s2 + $0x478] sm:$0xff] %vm2315_vm0, %v2170_v61  ;;  %2458 = vst.msk [vmem:[%s5509_s2 + $0x470] sm:$0xff] %vm2315_vm0, %v2169_v62 }
 0x19d   :  { %v1315_v3 = vpop.permute.xlu1 %1314  ;;  %v1310_v4 = vpop.permute.xlu0 %1309 }
 0x19e   :  { %v2172_v5 = vmul.f32 %v1315_v3, %v444_v63  ;;  %v2171_v6 = vmul.f32 %v1310_v4, %v443_v0  ;;  %1624 = vperm.xlu1 %2610, %v218_v1   ;;  %1619 = vperm.xlu0 %2609, %v217_v2   ;;  %v460_v63 = vld [vmem:[%s5508_s1 + $0x508] sm:$0xff]  ;;  %v459_v0 = vld [vmem:[%s5508_s1 + $0x500] sm:$0xff]  ;;  %v234_v1 = vld [vmem:[%s5507_s0 + $0x6f8] sm:$0xff] }
 0x19f   :  { %v233_v2 = vld [vmem:[%s5507_s0 + $0x6f0] sm:$0xff] }
 0x1a0   :  { %2461 = vst.msk [vmem:[%s5509_s2 + $0x488] sm:$0xff] %vm2315_vm0, %v2172_v5  ;;  %2460 = vst.msk [vmem:[%s5509_s2 + $0x480] sm:$0xff] %vm2315_vm0, %v2171_v6 }
 0x1a1   :  { %v1325_v11 = vpop.permute.xlu1 %1324  ;;  %v1320_v12 = vpop.permute.xlu0 %1319 }
 0x1a2   :  { %v2174_v13 = vmul.f32 %v1325_v11, %v446_v7  ;;  %v2173_v14 = vmul.f32 %v1320_v12, %v445_v8  ;;  %1634 = vperm.xlu1 %2610, %v220_v9   ;;  %1629 = vperm.xlu0 %2609, %v219_v10   ;;  %v462_v7 = vld [vmem:[%s5508_s1 + $0x518] sm:$0xff]  ;;  %v461_v8 = vld [vmem:[%s5508_s1 + $0x510] sm:$0xff]  ;;  %v236_v9 = vld [vmem:[%s5507_s0 + $0x708] sm:$0xff] }
 0x1a3   :  { %v235_v10 = vld [vmem:[%s5507_s0 + $0x700] sm:$0xff] }
 0x1a4   :  { %2463 = vst.msk [vmem:[%s5509_s2 + $0x498] sm:$0xff] %vm2315_vm0, %v2174_v13  ;;  %2462 = vst.msk [vmem:[%s5509_s2 + $0x490] sm:$0xff] %vm2315_vm0, %v2173_v14 }
 0x1a5   :  { %v1335_v19 = vpop.permute.xlu1 %1334  ;;  %v1330_v20 = vpop.permute.xlu0 %1329 }
 0x1a6   :  { %v2176_v21 = vmul.f32 %v1335_v19, %v448_v15  ;;  %v2175_v22 = vmul.f32 %v1330_v20, %v447_v16  ;;  %1644 = vperm.xlu1 %2610, %v222_v17   ;;  %1639 = vperm.xlu0 %2609, %v221_v18   ;;  %v464_v15 = vld [vmem:[%s5508_s1 + $0x528] sm:$0xff]  ;;  %v463_v16 = vld [vmem:[%s5508_s1 + $0x520] sm:$0xff]  ;;  %v238_v17 = vld [vmem:[%s5507_s0 + $0x718] sm:$0xff] }
 0x1a7   :  { %v237_v18 = vld [vmem:[%s5507_s0 + $0x710] sm:$0xff] }
 0x1a8   :  { %2465 = vst.msk [vmem:[%s5509_s2 + $0x4a8] sm:$0xff] %vm2315_vm0, %v2176_v21  ;;  %2464 = vst.msk [vmem:[%s5509_s2 + $0x4a0] sm:$0xff] %vm2315_vm0, %v2175_v22 }
 0x1a9   :  { %v1345_v27 = vpop.permute.xlu1 %1344  ;;  %v1340_v28 = vpop.permute.xlu0 %1339 }
 0x1aa   :  { %v2178_v29 = vmul.f32 %v1345_v27, %v450_v23  ;;  %v2177_v30 = vmul.f32 %v1340_v28, %v449_v24  ;;  %1654 = vperm.xlu1 %2610, %v224_v25   ;;  %1649 = vperm.xlu0 %2609, %v223_v26   ;;  %v466_v23 = vld [vmem:[%s5508_s1 + $0x538] sm:$0xff]  ;;  %v465_v24 = vld [vmem:[%s5508_s1 + $0x530] sm:$0xff]  ;;  %v240_v25 = vld [vmem:[%s5507_s0 + $0x728] sm:$0xff] }
 0x1ab   :  { %v239_v26 = vld [vmem:[%s5507_s0 + $0x720] sm:$0xff] }
 0x1ac   :  { %2467 = vst.msk [vmem:[%s5509_s2 + $0x4b8] sm:$0xff] %vm2315_vm0, %v2178_v29  ;;  %2466 = vst.msk [vmem:[%s5509_s2 + $0x4b0] sm:$0xff] %vm2315_vm0, %v2177_v30 }
 0x1ad   :  { %v1355_v35 = vpop.permute.xlu1 %1354  ;;  %v1350_v36 = vpop.permute.xlu0 %1349 }
 0x1ae   :  { %v2180_v37 = vmul.f32 %v1355_v35, %v452_v31  ;;  %v2179_v38 = vmul.f32 %v1350_v36, %v451_v32  ;;  %1664 = vperm.xlu1 %2610, %v226_v33   ;;  %1659 = vperm.xlu0 %2609, %v225_v34   ;;  %v468_v31 = vld [vmem:[%s5508_s1 + $0x548] sm:$0xff]  ;;  %v467_v32 = vld [vmem:[%s5508_s1 + $0x540] sm:$0xff]  ;;  %v242_v33 = vld [vmem:[%s5507_s0 + $0x738] sm:$0xff] }
 0x1af   :  { %v241_v34 = vld [vmem:[%s5507_s0 + $0x730] sm:$0xff] }
 0x1b0   :  { %2469 = vst.msk [vmem:[%s5509_s2 + $0x4c8] sm:$0xff] %vm2315_vm0, %v2180_v37  ;;  %2468 = vst.msk [vmem:[%s5509_s2 + $0x4c0] sm:$0xff] %vm2315_vm0, %v2179_v38 }
 0x1b1   :  { %v1365_v43 = vpop.permute.xlu1 %1364  ;;  %v1360_v44 = vpop.permute.xlu0 %1359 }
 0x1b2   :  { %v2182_v45 = vmul.f32 %v1365_v43, %v454_v39  ;;  %v2181_v46 = vmul.f32 %v1360_v44, %v453_v40  ;;  %1674 = vperm.xlu1 %2610, %v228_v41   ;;  %1669 = vperm.xlu0 %2609, %v227_v42   ;;  %v470_v39 = vld [vmem:[%s5508_s1 + $0x558] sm:$0xff]  ;;  %v469_v40 = vld [vmem:[%s5508_s1 + $0x550] sm:$0xff]  ;;  %v244_v41 = vld [vmem:[%s5507_s0 + $0x748] sm:$0xff] }
 0x1b3   :  { %v243_v42 = vld [vmem:[%s5507_s0 + $0x740] sm:$0xff] }
 0x1b4   :  { %2471 = vst.msk [vmem:[%s5509_s2 + $0x4d8] sm:$0xff] %vm2315_vm0, %v2182_v45  ;;  %2470 = vst.msk [vmem:[%s5509_s2 + $0x4d0] sm:$0xff] %vm2315_vm0, %v2181_v46 }
 0x1b5   :  { %v1375_v51 = vpop.permute.xlu1 %1374  ;;  %v1370_v52 = vpop.permute.xlu0 %1369 }
 0x1b6   :  { %v2184_v53 = vmul.f32 %v1375_v51, %v456_v47  ;;  %v2183_v54 = vmul.f32 %v1370_v52, %v455_v48  ;;  %1684 = vperm.xlu1 %2610, %v230_v49   ;;  %1679 = vperm.xlu0 %2609, %v229_v50   ;;  %v472_v47 = vld [vmem:[%s5508_s1 + $0x568] sm:$0xff]  ;;  %v471_v48 = vld [vmem:[%s5508_s1 + $0x560] sm:$0xff]  ;;  %v246_v49 = vld [vmem:[%s5507_s0 + $0x758] sm:$0xff] }
 0x1b7   :  { %v245_v50 = vld [vmem:[%s5507_s0 + $0x750] sm:$0xff] }
 0x1b8   :  { %2473 = vst.msk [vmem:[%s5509_s2 + $0x4e8] sm:$0xff] %vm2315_vm0, %v2184_v53  ;;  %2472 = vst.msk [vmem:[%s5509_s2 + $0x4e0] sm:$0xff] %vm2315_vm0, %v2183_v54 }
 0x1b9   :  { %v1385_v59 = vpop.permute.xlu1 %1384  ;;  %v1380_v60 = vpop.permute.xlu0 %1379 }
 0x1ba   :  { %v2186_v61 = vmul.f32 %v1385_v59, %v458_v55  ;;  %v2185_v62 = vmul.f32 %v1380_v60, %v457_v56  ;;  %1694 = vperm.xlu1 %2610, %v232_v57   ;;  %1689 = vperm.xlu0 %2609, %v231_v58   ;;  %v474_v55 = vld [vmem:[%s5508_s1 + $0x578] sm:$0xff]  ;;  %v473_v56 = vld [vmem:[%s5508_s1 + $0x570] sm:$0xff]  ;;  %v248_v57 = vld [vmem:[%s5507_s0 + $0x768] sm:$0xff] }
 0x1bb   :  { %v247_v58 = vld [vmem:[%s5507_s0 + $0x760] sm:$0xff] }
 0x1bc   :  { %2475 = vst.msk [vmem:[%s5509_s2 + $0x4f8] sm:$0xff] %vm2315_vm0, %v2186_v61  ;;  %2474 = vst.msk [vmem:[%s5509_s2 + $0x4f0] sm:$0xff] %vm2315_vm0, %v2185_v62 }
 0x1bd   :  { %v1395_v3 = vpop.permute.xlu1 %1394  ;;  %v1390_v4 = vpop.permute.xlu0 %1389 }
 0x1be   :  { %v2188_v5 = vmul.f32 %v1395_v3, %v460_v63  ;;  %v2187_v6 = vmul.f32 %v1390_v4, %v459_v0  ;;  %1704 = vperm.xlu1 %2610, %v234_v1   ;;  %1699 = vperm.xlu0 %2609, %v233_v2   ;;  %v476_v63 = vld [vmem:[%s5508_s1 + $0x588] sm:$0xff]  ;;  %v475_v0 = vld [vmem:[%s5508_s1 + $0x580] sm:$0xff]  ;;  %v250_v1 = vld [vmem:[%s5507_s0 + $0x778] sm:$0xff] }
 0x1bf   :  { %v249_v2 = vld [vmem:[%s5507_s0 + $0x770] sm:$0xff] }
 0x1c0   :  { %2477 = vst.msk [vmem:[%s5509_s2 + $0x508] sm:$0xff] %vm2315_vm0, %v2188_v5  ;;  %2476 = vst.msk [vmem:[%s5509_s2 + $0x500] sm:$0xff] %vm2315_vm0, %v2187_v6 }
 0x1c1   :  { %v1405_v11 = vpop.permute.xlu1 %1404  ;;  %v1400_v12 = vpop.permute.xlu0 %1399 }
 0x1c2   :  { %v2190_v13 = vmul.f32 %v1405_v11, %v462_v7  ;;  %v2189_v14 = vmul.f32 %v1400_v12, %v461_v8  ;;  %1714 = vperm.xlu1 %2610, %v236_v9   ;;  %1709 = vperm.xlu0 %2609, %v235_v10   ;;  %v478_v7 = vld [vmem:[%s5508_s1 + $0x598] sm:$0xff]  ;;  %v477_v8 = vld [vmem:[%s5508_s1 + $0x590] sm:$0xff]  ;;  %v252_v9 = vld [vmem:[%s5507_s0 + $0x788] sm:$0xff] }
 0x1c3   :  { %v251_v10 = vld [vmem:[%s5507_s0 + $0x780] sm:$0xff] }
 0x1c4   :  { %2479 = vst.msk [vmem:[%s5509_s2 + $0x518] sm:$0xff] %vm2315_vm0, %v2190_v13  ;;  %2478 = vst.msk [vmem:[%s5509_s2 + $0x510] sm:$0xff] %vm2315_vm0, %v2189_v14 }
 0x1c5   :  { %v1415_v19 = vpop.permute.xlu1 %1414  ;;  %v1410_v20 = vpop.permute.xlu0 %1409 }
 0x1c6   :  { %v2192_v21 = vmul.f32 %v1415_v19, %v464_v15  ;;  %v2191_v22 = vmul.f32 %v1410_v20, %v463_v16  ;;  %1724 = vperm.xlu1 %2610, %v238_v17   ;;  %1719 = vperm.xlu0 %2609, %v237_v18   ;;  %v480_v15 = vld [vmem:[%s5508_s1 + $0x5a8] sm:$0xff]  ;;  %v479_v16 = vld [vmem:[%s5508_s1 + $0x5a0] sm:$0xff]  ;;  %v254_v17 = vld [vmem:[%s5507_s0 + $0x798] sm:$0xff] }
 0x1c7   :  { %v253_v18 = vld [vmem:[%s5507_s0 + $0x790] sm:$0xff] }
 0x1c8   :  { %2481 = vst.msk [vmem:[%s5509_s2 + $0x528] sm:$0xff] %vm2315_vm0, %v2192_v21  ;;  %2480 = vst.msk [vmem:[%s5509_s2 + $0x520] sm:$0xff] %vm2315_vm0, %v2191_v22 }
 0x1c9   :  { %v1425_v27 = vpop.permute.xlu1 %1424  ;;  %v1420_v28 = vpop.permute.xlu0 %1419 }
 0x1ca   :  { %v2194_v29 = vmul.f32 %v1425_v27, %v466_v23  ;;  %v2193_v30 = vmul.f32 %v1420_v28, %v465_v24  ;;  %1734 = vperm.xlu1 %2610, %v240_v25   ;;  %1729 = vperm.xlu0 %2609, %v239_v26   ;;  %v482_v23 = vld [vmem:[%s5508_s1 + $0x5b8] sm:$0xff]  ;;  %v481_v24 = vld [vmem:[%s5508_s1 + $0x5b0] sm:$0xff]  ;;  %v256_v25 = vld [vmem:[%s5507_s0 + $0x7a8] sm:$0xff] }
 0x1cb   :  { %v255_v26 = vld [vmem:[%s5507_s0 + $0x7a0] sm:$0xff] }
 0x1cc   :  { %2483 = vst.msk [vmem:[%s5509_s2 + $0x538] sm:$0xff] %vm2315_vm0, %v2194_v29  ;;  %2482 = vst.msk [vmem:[%s5509_s2 + $0x530] sm:$0xff] %vm2315_vm0, %v2193_v30 }
 0x1cd   :  { %v1435_v35 = vpop.permute.xlu1 %1434  ;;  %v1430_v36 = vpop.permute.xlu0 %1429 }
 0x1ce   :  { %v2196_v37 = vmul.f32 %v1435_v35, %v468_v31  ;;  %v2195_v38 = vmul.f32 %v1430_v36, %v467_v32  ;;  %1744 = vperm.xlu1 %2610, %v242_v33   ;;  %1739 = vperm.xlu0 %2609, %v241_v34   ;;  %v484_v31 = vld [vmem:[%s5508_s1 + $0x5c8] sm:$0xff]  ;;  %v483_v32 = vld [vmem:[%s5508_s1 + $0x5c0] sm:$0xff]  ;;  %v258_v33 = vld [vmem:[%s5507_s0 + $0x7b8] sm:$0xff] }
 0x1cf   :  { %v257_v34 = vld [vmem:[%s5507_s0 + $0x7b0] sm:$0xff] }
 0x1d0   :  { %2485 = vst.msk [vmem:[%s5509_s2 + $0x548] sm:$0xff] %vm2315_vm0, %v2196_v37  ;;  %2484 = vst.msk [vmem:[%s5509_s2 + $0x540] sm:$0xff] %vm2315_vm0, %v2195_v38 }
 0x1d1   :  { %v1445_v43 = vpop.permute.xlu1 %1444  ;;  %v1440_v44 = vpop.permute.xlu0 %1439 }
 0x1d2   :  { %v2198_v45 = vmul.f32 %v1445_v43, %v470_v39  ;;  %v2197_v46 = vmul.f32 %v1440_v44, %v469_v40  ;;  %1754 = vperm.xlu1 %2610, %v244_v41   ;;  %1749 = vperm.xlu0 %2609, %v243_v42   ;;  %v486_v39 = vld [vmem:[%s5508_s1 + $0x5d8] sm:$0xff]  ;;  %v485_v40 = vld [vmem:[%s5508_s1 + $0x5d0] sm:$0xff]  ;;  %v260_v41 = vld [vmem:[%s5507_s0 + $0x7c8] sm:$0xff] }
 0x1d3   :  { %v259_v42 = vld [vmem:[%s5507_s0 + $0x7c0] sm:$0xff] }
 0x1d4   :  { %2487 = vst.msk [vmem:[%s5509_s2 + $0x558] sm:$0xff] %vm2315_vm0, %v2198_v45  ;;  %2486 = vst.msk [vmem:[%s5509_s2 + $0x550] sm:$0xff] %vm2315_vm0, %v2197_v46 }
 0x1d5   :  { %v1455_v51 = vpop.permute.xlu1 %1454  ;;  %v1450_v52 = vpop.permute.xlu0 %1449 }
 0x1d6   :  { %v2200_v53 = vmul.f32 %v1455_v51, %v472_v47  ;;  %v2199_v54 = vmul.f32 %v1450_v52, %v471_v48  ;;  %1764 = vperm.xlu1 %2610, %v246_v49   ;;  %1759 = vperm.xlu0 %2609, %v245_v50   ;;  %v488_v47 = vld [vmem:[%s5508_s1 + $0x5e8] sm:$0xff]  ;;  %v487_v48 = vld [vmem:[%s5508_s1 + $0x5e0] sm:$0xff]  ;;  %v262_v49 = vld [vmem:[%s5507_s0 + $0x7d8] sm:$0xff] }
 0x1d7   :  { %v261_v50 = vld [vmem:[%s5507_s0 + $0x7d0] sm:$0xff] }
 0x1d8   :  { %2489 = vst.msk [vmem:[%s5509_s2 + $0x568] sm:$0xff] %vm2315_vm0, %v2200_v53  ;;  %2488 = vst.msk [vmem:[%s5509_s2 + $0x560] sm:$0xff] %vm2315_vm0, %v2199_v54 }
 0x1d9   :  { %v1465_v59 = vpop.permute.xlu1 %1464  ;;  %v1460_v60 = vpop.permute.xlu0 %1459 }
 0x1da   :  { %v2202_v61 = vmul.f32 %v1465_v59, %v474_v55  ;;  %v2201_v62 = vmul.f32 %v1460_v60, %v473_v56  ;;  %1774 = vperm.xlu1 %2610, %v248_v57   ;;  %1769 = vperm.xlu0 %2609, %v247_v58   ;;  %v490_v55 = vld [vmem:[%s5508_s1 + $0x5f8] sm:$0xff]  ;;  %v489_v56 = vld [vmem:[%s5508_s1 + $0x5f0] sm:$0xff]  ;;  %v264_v57 = vld [vmem:[%s5507_s0 + $0x7e8] sm:$0xff] }
 0x1db   :  { %v263_v58 = vld [vmem:[%s5507_s0 + $0x7e0] sm:$0xff] }
 0x1dc   :  { %2491 = vst.msk [vmem:[%s5509_s2 + $0x578] sm:$0xff] %vm2315_vm0, %v2202_v61  ;;  %2490 = vst.msk [vmem:[%s5509_s2 + $0x570] sm:$0xff] %vm2315_vm0, %v2201_v62 }
 0x1dd   :  { %v1475_v3 = vpop.permute.xlu1 %1474  ;;  %v1470_v4 = vpop.permute.xlu0 %1469 }
 0x1de   :  { %v2204_v5 = vmul.f32 %v1475_v3, %v476_v63  ;;  %v2203_v6 = vmul.f32 %v1470_v4, %v475_v0  ;;  %1784 = vperm.xlu1 %2610, %v250_v1   ;;  %1779 = vperm.xlu0 %2609, %v249_v2   ;;  %v492_v63 = vld [vmem:[%s5508_s1 + $0x608] sm:$0xff]  ;;  %v491_v0 = vld [vmem:[%s5508_s1 + $0x600] sm:$0xff]  ;;  %v266_v1 = vld [vmem:[%s5507_s0 + $0x7f8] sm:$0xff] }
 0x1df   :  { %v265_v2 = vld [vmem:[%s5507_s0 + $0x7f0] sm:$0xff] }
 0x1e0   :  { %2493 = vst.msk [vmem:[%s5509_s2 + $0x588] sm:$0xff] %vm2315_vm0, %v2204_v5  ;;  %2492 = vst.msk [vmem:[%s5509_s2 + $0x580] sm:$0xff] %vm2315_vm0, %v2203_v6 }
 0x1e1   :  { %v1485_v11 = vpop.permute.xlu1 %1484  ;;  %v1480_v12 = vpop.permute.xlu0 %1479 }
 0x1e2   :  { %v2206_v13 = vmul.f32 %v1485_v11, %v478_v7  ;;  %v2205_v14 = vmul.f32 %v1480_v12, %v477_v8  ;;  %1794 = vperm.xlu1 %2610, %v252_v9   ;;  %1789 = vperm.xlu0 %2609, %v251_v10   ;;  %v494_v7 = vld [vmem:[%s5508_s1 + $0x618] sm:$0xff]  ;;  %v493_v8 = vld [vmem:[%s5508_s1 + $0x610] sm:$0xff]  ;;  %v268_v9 = vld [vmem:[%s5507_s0 + $0x808] sm:$0xff] }
 0x1e3   :  { %v267_v10 = vld [vmem:[%s5507_s0 + $0x800] sm:$0xff] }
 0x1e4   :  { %2495 = vst.msk [vmem:[%s5509_s2 + $0x598] sm:$0xff] %vm2315_vm0, %v2206_v13  ;;  %2494 = vst.msk [vmem:[%s5509_s2 + $0x590] sm:$0xff] %vm2315_vm0, %v2205_v14 }
 0x1e5   :  { %v1495_v19 = vpop.permute.xlu1 %1494  ;;  %v1490_v20 = vpop.permute.xlu0 %1489 }
 0x1e6   :  { %v2208_v21 = vmul.f32 %v1495_v19, %v480_v15  ;;  %v2207_v22 = vmul.f32 %v1490_v20, %v479_v16  ;;  %1804 = vperm.xlu1 %2610, %v254_v17   ;;  %1799 = vperm.xlu0 %2609, %v253_v18   ;;  %v496_v15 = vld [vmem:[%s5508_s1 + $0x628] sm:$0xff]  ;;  %v495_v16 = vld [vmem:[%s5508_s1 + $0x620] sm:$0xff]  ;;  %v270_v17 = vld [vmem:[%s5507_s0 + $0x818] sm:$0xff] }
 0x1e7   :  { %v269_v18 = vld [vmem:[%s5507_s0 + $0x810] sm:$0xff] }
 0x1e8   :  { %2497 = vst.msk [vmem:[%s5509_s2 + $0x5a8] sm:$0xff] %vm2315_vm0, %v2208_v21  ;;  %2496 = vst.msk [vmem:[%s5509_s2 + $0x5a0] sm:$0xff] %vm2315_vm0, %v2207_v22 }
 0x1e9   :  { %v1505_v27 = vpop.permute.xlu1 %1504  ;;  %v1500_v28 = vpop.permute.xlu0 %1499 }
 0x1ea   :  { %v2210_v29 = vmul.f32 %v1505_v27, %v482_v23  ;;  %v2209_v30 = vmul.f32 %v1500_v28, %v481_v24  ;;  %1814 = vperm.xlu1 %2610, %v256_v25   ;;  %1809 = vperm.xlu0 %2609, %v255_v26   ;;  %v498_v23 = vld [vmem:[%s5508_s1 + $0x638] sm:$0xff]  ;;  %v497_v24 = vld [vmem:[%s5508_s1 + $0x630] sm:$0xff]  ;;  %v272_v25 = vld [vmem:[%s5507_s0 + $0x828] sm:$0xff] }
 0x1eb   :  { %v271_v26 = vld [vmem:[%s5507_s0 + $0x820] sm:$0xff] }
 0x1ec   :  { %2499 = vst.msk [vmem:[%s5509_s2 + $0x5b8] sm:$0xff] %vm2315_vm0, %v2210_v29  ;;  %2498 = vst.msk [vmem:[%s5509_s2 + $0x5b0] sm:$0xff] %vm2315_vm0, %v2209_v30 }
 0x1ed   :  { %v1515_v35 = vpop.permute.xlu1 %1514  ;;  %v1510_v36 = vpop.permute.xlu0 %1509 }
 0x1ee   :  { %v2212_v37 = vmul.f32 %v1515_v35, %v484_v31  ;;  %v2211_v38 = vmul.f32 %v1510_v36, %v483_v32  ;;  %1824 = vperm.xlu1 %2610, %v258_v33   ;;  %1819 = vperm.xlu0 %2609, %v257_v34   ;;  %v500_v31 = vld [vmem:[%s5508_s1 + $0x648] sm:$0xff]  ;;  %v499_v32 = vld [vmem:[%s5508_s1 + $0x640] sm:$0xff]  ;;  %v274_v33 = vld [vmem:[%s5507_s0 + $0x838] sm:$0xff] }
 0x1ef   :  { %v273_v34 = vld [vmem:[%s5507_s0 + $0x830] sm:$0xff] }
 0x1f0   :  { %2501 = vst.msk [vmem:[%s5509_s2 + $0x5c8] sm:$0xff] %vm2315_vm0, %v2212_v37  ;;  %2500 = vst.msk [vmem:[%s5509_s2 + $0x5c0] sm:$0xff] %vm2315_vm0, %v2211_v38 }
 0x1f1   :  { %v1525_v43 = vpop.permute.xlu1 %1524  ;;  %v1520_v44 = vpop.permute.xlu0 %1519 }
 0x1f2   :  { %v2214_v45 = vmul.f32 %v1525_v43, %v486_v39  ;;  %v2213_v46 = vmul.f32 %v1520_v44, %v485_v40  ;;  %1834 = vperm.xlu1 %2610, %v260_v41   ;;  %1829 = vperm.xlu0 %2609, %v259_v42   ;;  %v502_v39 = vld [vmem:[%s5508_s1 + $0x658] sm:$0xff]  ;;  %v501_v40 = vld [vmem:[%s5508_s1 + $0x650] sm:$0xff]  ;;  %v276_v41 = vld [vmem:[%s5507_s0 + $0x848] sm:$0xff] }
 0x1f3   :  { %v275_v42 = vld [vmem:[%s5507_s0 + $0x840] sm:$0xff] }
 0x1f4   :  { %2503 = vst.msk [vmem:[%s5509_s2 + $0x5d8] sm:$0xff] %vm2315_vm0, %v2214_v45  ;;  %2502 = vst.msk [vmem:[%s5509_s2 + $0x5d0] sm:$0xff] %vm2315_vm0, %v2213_v46 }
 0x1f5   :  { %v1535_v51 = vpop.permute.xlu1 %1534  ;;  %v1530_v52 = vpop.permute.xlu0 %1529 }
 0x1f6   :  { %v2216_v53 = vmul.f32 %v1535_v51, %v488_v47  ;;  %v2215_v54 = vmul.f32 %v1530_v52, %v487_v48  ;;  %1844 = vperm.xlu1 %2610, %v262_v49   ;;  %1839 = vperm.xlu0 %2609, %v261_v50   ;;  %v504_v47 = vld [vmem:[%s5508_s1 + $0x668] sm:$0xff]  ;;  %v503_v48 = vld [vmem:[%s5508_s1 + $0x660] sm:$0xff]  ;;  %v278_v49 = vld [vmem:[%s5507_s0 + $0x858] sm:$0xff] }
 0x1f7   :  { %v277_v50 = vld [vmem:[%s5507_s0 + $0x850] sm:$0xff] }
 0x1f8   :  { %2505 = vst.msk [vmem:[%s5509_s2 + $0x5e8] sm:$0xff] %vm2315_vm0, %v2216_v53  ;;  %2504 = vst.msk [vmem:[%s5509_s2 + $0x5e0] sm:$0xff] %vm2315_vm0, %v2215_v54 }
 0x1f9   :  { %v1545_v59 = vpop.permute.xlu1 %1544  ;;  %v1540_v60 = vpop.permute.xlu0 %1539 }
 0x1fa   :  { %v2218_v61 = vmul.f32 %v1545_v59, %v490_v55  ;;  %v2217_v62 = vmul.f32 %v1540_v60, %v489_v56  ;;  %1854 = vperm.xlu1 %2610, %v264_v57   ;;  %1849 = vperm.xlu0 %2609, %v263_v58   ;;  %v506_v55 = vld [vmem:[%s5508_s1 + $0x678] sm:$0xff]  ;;  %v505_v56 = vld [vmem:[%s5508_s1 + $0x670] sm:$0xff]  ;;  %v280_v57 = vld [vmem:[%s5507_s0 + $0x868] sm:$0xff] }
 0x1fb   :  { %v279_v58 = vld [vmem:[%s5507_s0 + $0x860] sm:$0xff] }
 0x1fc   :  { %2507 = vst.msk [vmem:[%s5509_s2 + $0x5f8] sm:$0xff] %vm2315_vm0, %v2218_v61  ;;  %2506 = vst.msk [vmem:[%s5509_s2 + $0x5f0] sm:$0xff] %vm2315_vm0, %v2217_v62 }
 0x1fd   :  { %v1555_v3 = vpop.permute.xlu1 %1554  ;;  %v1550_v4 = vpop.permute.xlu0 %1549 }
 0x1fe   :  { %v2220_v5 = vmul.f32 %v1555_v3, %v492_v63  ;;  %v2219_v6 = vmul.f32 %v1550_v4, %v491_v0  ;;  %1864 = vperm.xlu1 %2610, %v266_v1   ;;  %1859 = vperm.xlu0 %2609, %v265_v2   ;;  %v508_v63 = vld [vmem:[%s5508_s1 + $0x688] sm:$0xff]  ;;  %v507_v0 = vld [vmem:[%s5508_s1 + $0x680] sm:$0xff]  ;;  %v282_v1 = vld [vmem:[%s5507_s0 + $0x878] sm:$0xff] }
 0x1ff   :  { %v281_v2 = vld [vmem:[%s5507_s0 + $0x870] sm:$0xff] }
 0x200   :  { %2509 = vst.msk [vmem:[%s5509_s2 + $0x608] sm:$0xff] %vm2315_vm0, %v2220_v5  ;;  %2508 = vst.msk [vmem:[%s5509_s2 + $0x600] sm:$0xff] %vm2315_vm0, %v2219_v6 }
 0x201   :  { %v1565_v11 = vpop.permute.xlu1 %1564  ;;  %v1560_v12 = vpop.permute.xlu0 %1559 }
 0x202   :  { %v2222_v13 = vmul.f32 %v1565_v11, %v494_v7  ;;  %v2221_v14 = vmul.f32 %v1560_v12, %v493_v8  ;;  %1874 = vperm.xlu1 %2610, %v268_v9   ;;  %1869 = vperm.xlu0 %2609, %v267_v10   ;;  %v510_v7 = vld [vmem:[%s5508_s1 + $0x698] sm:$0xff]  ;;  %v509_v8 = vld [vmem:[%s5508_s1 + $0x690] sm:$0xff]  ;;  %v284_v9 = vld [vmem:[%s5507_s0 + $0x888] sm:$0xff] }
 0x203   :  { %v283_v10 = vld [vmem:[%s5507_s0 + $0x880] sm:$0xff] }
 0x204   :  { %2511 = vst.msk [vmem:[%s5509_s2 + $0x618] sm:$0xff] %vm2315_vm0, %v2222_v13  ;;  %2510 = vst.msk [vmem:[%s5509_s2 + $0x610] sm:$0xff] %vm2315_vm0, %v2221_v14 }
 0x205   :  { %v1575_v19 = vpop.permute.xlu1 %1574  ;;  %v1570_v20 = vpop.permute.xlu0 %1569 }
 0x206   :  { %v2224_v21 = vmul.f32 %v1575_v19, %v496_v15  ;;  %v2223_v22 = vmul.f32 %v1570_v20, %v495_v16  ;;  %1884 = vperm.xlu1 %2610, %v270_v17   ;;  %1879 = vperm.xlu0 %2609, %v269_v18   ;;  %v512_v15 = vld [vmem:[%s5508_s1 + $0x6a8] sm:$0xff]  ;;  %v511_v16 = vld [vmem:[%s5508_s1 + $0x6a0] sm:$0xff]  ;;  %v286_v17 = vld [vmem:[%s5507_s0 + $0x898] sm:$0xff] }
 0x207   :  { %v285_v18 = vld [vmem:[%s5507_s0 + $0x890] sm:$0xff] }
 0x208   :  { %2513 = vst.msk [vmem:[%s5509_s2 + $0x628] sm:$0xff] %vm2315_vm0, %v2224_v21  ;;  %2512 = vst.msk [vmem:[%s5509_s2 + $0x620] sm:$0xff] %vm2315_vm0, %v2223_v22 }
 0x209   :  { %v1585_v27 = vpop.permute.xlu1 %1584  ;;  %v1580_v28 = vpop.permute.xlu0 %1579 }
 0x20a   :  { %v2226_v29 = vmul.f32 %v1585_v27, %v498_v23  ;;  %v2225_v30 = vmul.f32 %v1580_v28, %v497_v24  ;;  %1894 = vperm.xlu1 %2610, %v272_v25   ;;  %1889 = vperm.xlu0 %2609, %v271_v26   ;;  %v514_v23 = vld [vmem:[%s5508_s1 + $0x6b8] sm:$0xff]  ;;  %v513_v24 = vld [vmem:[%s5508_s1 + $0x6b0] sm:$0xff]  ;;  %v288_v25 = vld [vmem:[%s5507_s0 + $0x8a8] sm:$0xff] }
 0x20b   :  { %v287_v26 = vld [vmem:[%s5507_s0 + $0x8a0] sm:$0xff] }
 0x20c   :  { %2515 = vst.msk [vmem:[%s5509_s2 + $0x638] sm:$0xff] %vm2315_vm0, %v2226_v29  ;;  %2514 = vst.msk [vmem:[%s5509_s2 + $0x630] sm:$0xff] %vm2315_vm0, %v2225_v30 }
 0x20d   :  { %v1595_v35 = vpop.permute.xlu1 %1594  ;;  %v1590_v36 = vpop.permute.xlu0 %1589 }
 0x20e   :  { %v2228_v37 = vmul.f32 %v1595_v35, %v500_v31  ;;  %v2227_v38 = vmul.f32 %v1590_v36, %v499_v32  ;;  %1904 = vperm.xlu1 %2610, %v274_v33   ;;  %1899 = vperm.xlu0 %2609, %v273_v34   ;;  %v516_v31 = vld [vmem:[%s5508_s1 + $0x6c8] sm:$0xff]  ;;  %v515_v32 = vld [vmem:[%s5508_s1 + $0x6c0] sm:$0xff]  ;;  %v290_v33 = vld [vmem:[%s5507_s0 + $0x8b8] sm:$0xff] }
 0x20f   :  { %v289_v34 = vld [vmem:[%s5507_s0 + $0x8b0] sm:$0xff] }
 0x210   :  { %2517 = vst.msk [vmem:[%s5509_s2 + $0x648] sm:$0xff] %vm2315_vm0, %v2228_v37  ;;  %2516 = vst.msk [vmem:[%s5509_s2 + $0x640] sm:$0xff] %vm2315_vm0, %v2227_v38 }
 0x211   :  { %v1605_v43 = vpop.permute.xlu1 %1604  ;;  %v1600_v44 = vpop.permute.xlu0 %1599 }
 0x212   :  { %v2230_v45 = vmul.f32 %v1605_v43, %v502_v39  ;;  %v2229_v46 = vmul.f32 %v1600_v44, %v501_v40  ;;  %1914 = vperm.xlu1 %2610, %v276_v41   ;;  %1909 = vperm.xlu0 %2609, %v275_v42   ;;  %v518_v39 = vld [vmem:[%s5508_s1 + $0x6d8] sm:$0xff]  ;;  %v517_v40 = vld [vmem:[%s5508_s1 + $0x6d0] sm:$0xff]  ;;  %v292_v41 = vld [vmem:[%s5507_s0 + $0x8c8] sm:$0xff] }
 0x213   :  { %v291_v42 = vld [vmem:[%s5507_s0 + $0x8c0] sm:$0xff] }
 0x214   :  { %2519 = vst.msk [vmem:[%s5509_s2 + $0x658] sm:$0xff] %vm2315_vm0, %v2230_v45  ;;  %2518 = vst.msk [vmem:[%s5509_s2 + $0x650] sm:$0xff] %vm2315_vm0, %v2229_v46 }
 0x215   :  { %v1615_v51 = vpop.permute.xlu1 %1614  ;;  %v1610_v52 = vpop.permute.xlu0 %1609 }
 0x216   :  { %v2232_v53 = vmul.f32 %v1615_v51, %v504_v47  ;;  %v2231_v54 = vmul.f32 %v1610_v52, %v503_v48  ;;  %1924 = vperm.xlu1 %2610, %v278_v49   ;;  %1919 = vperm.xlu0 %2609, %v277_v50   ;;  %v520_v47 = vld [vmem:[%s5508_s1 + $0x6e8] sm:$0xff]  ;;  %v519_v48 = vld [vmem:[%s5508_s1 + $0x6e0] sm:$0xff]  ;;  %v294_v49 = vld [vmem:[%s5507_s0 + $0x8d8] sm:$0xff] }
 0x217   :  { %v293_v50 = vld [vmem:[%s5507_s0 + $0x8d0] sm:$0xff] }
 0x218   :  { %2521 = vst.msk [vmem:[%s5509_s2 + $0x668] sm:$0xff] %vm2315_vm0, %v2232_v53  ;;  %2520 = vst.msk [vmem:[%s5509_s2 + $0x660] sm:$0xff] %vm2315_vm0, %v2231_v54 }
 0x219   :  { %v1625_v59 = vpop.permute.xlu1 %1624  ;;  %v1620_v60 = vpop.permute.xlu0 %1619 }
 0x21a   :  { %v2234_v61 = vmul.f32 %v1625_v59, %v506_v55  ;;  %v2233_v62 = vmul.f32 %v1620_v60, %v505_v56  ;;  %1934 = vperm.xlu1 %2610, %v280_v57   ;;  %1929 = vperm.xlu0 %2609, %v279_v58   ;;  %v522_v55 = vld [vmem:[%s5508_s1 + $0x6f8] sm:$0xff]  ;;  %v521_v56 = vld [vmem:[%s5508_s1 + $0x6f0] sm:$0xff]  ;;  %v296_v57 = vld [vmem:[%s5507_s0 + $0x8e8] sm:$0xff] }
 0x21b   :  { %v295_v58 = vld [vmem:[%s5507_s0 + $0x8e0] sm:$0xff] }
 0x21c   :  { %2523 = vst.msk [vmem:[%s5509_s2 + $0x678] sm:$0xff] %vm2315_vm0, %v2234_v61  ;;  %2522 = vst.msk [vmem:[%s5509_s2 + $0x670] sm:$0xff] %vm2315_vm0, %v2233_v62 }
 0x21d   :  { %v1635_v3 = vpop.permute.xlu1 %1634  ;;  %v1630_v4 = vpop.permute.xlu0 %1629 }
 0x21e   :  { %v2236_v5 = vmul.f32 %v1635_v3, %v508_v63  ;;  %v2235_v6 = vmul.f32 %v1630_v4, %v507_v0  ;;  %1944 = vperm.xlu1 %2610, %v282_v1   ;;  %1939 = vperm.xlu0 %2609, %v281_v2   ;;  %v524_v63 = vld [vmem:[%s5508_s1 + $0x708] sm:$0xff]  ;;  %v523_v0 = vld [vmem:[%s5508_s1 + $0x700] sm:$0xff]  ;;  %v298_v1 = vld [vmem:[%s5507_s0 + $0x8f8] sm:$0xff] }
 0x21f   :  { %v297_v2 = vld [vmem:[%s5507_s0 + $0x8f0] sm:$0xff] }
 0x220   :  { %2525 = vst.msk [vmem:[%s5509_s2 + $0x688] sm:$0xff] %vm2315_vm0, %v2236_v5  ;;  %2524 = vst.msk [vmem:[%s5509_s2 + $0x680] sm:$0xff] %vm2315_vm0, %v2235_v6 }
 0x221   :  { %v1645_v11 = vpop.permute.xlu1 %1644  ;;  %v1640_v12 = vpop.permute.xlu0 %1639 }
 0x222   :  { %v2238_v13 = vmul.f32 %v1645_v11, %v510_v7  ;;  %v2237_v14 = vmul.f32 %v1640_v12, %v509_v8  ;;  %1954 = vperm.xlu1 %2610, %v284_v9   ;;  %1949 = vperm.xlu0 %2609, %v283_v10   ;;  %v526_v7 = vld [vmem:[%s5508_s1 + $0x718] sm:$0xff]  ;;  %v525_v8 = vld [vmem:[%s5508_s1 + $0x710] sm:$0xff] }
 0x224   :  { %2527 = vst.msk [vmem:[%s5509_s2 + $0x698] sm:$0xff] %vm2315_vm0, %v2238_v13  ;;  %2526 = vst.msk [vmem:[%s5509_s2 + $0x690] sm:$0xff] %vm2315_vm0, %v2237_v14  ;;  %v528_v13 = vld [vmem:[%s5508_s1 + $0x728] sm:$0xff]  ;;  %v527_v14 = vld [vmem:[%s5508_s1 + $0x720] sm:$0xff] }
 0x225   :  { %v1655_v19 = vpop.permute.xlu1 %1654  ;;  %v1650_v20 = vpop.permute.xlu0 %1649 }
 0x226   :  { %v2240_v21 = vmul.f32 %v1655_v19, %v512_v15  ;;  %v2239_v22 = vmul.f32 %v1650_v20, %v511_v16  ;;  %1964 = vperm.xlu1 %2610, %v286_v17   ;;  %1959 = vperm.xlu0 %2609, %v285_v18   ;;  %v530_v19 = vld [vmem:[%s5508_s1 + $0x738] sm:$0xff]  ;;  %v529_v20 = vld [vmem:[%s5508_s1 + $0x730] sm:$0xff] }
 0x228   :  { %2529 = vst.msk [vmem:[%s5509_s2 + $0x6a8] sm:$0xff] %vm2315_vm0, %v2240_v21  ;;  %2528 = vst.msk [vmem:[%s5509_s2 + $0x6a0] sm:$0xff] %vm2315_vm0, %v2239_v22 }
 0x229   :  { %v1665_v27 = vpop.permute.xlu1 %1664  ;;  %v1660_v28 = vpop.permute.xlu0 %1659 }
 0x22a   :  { %v2242_v29 = vmul.f32 %v1665_v27, %v514_v23  ;;  %v2241_v30 = vmul.f32 %v1660_v28, %v513_v24  ;;  %1974 = vperm.xlu1 %2610, %v288_v25   ;;  %1969 = vperm.xlu0 %2609, %v287_v26   ;;  %v532_v25 = vld [vmem:[%s5508_s1 + $0x748] sm:$0xff]  ;;  %v531_v26 = vld [vmem:[%s5508_s1 + $0x740] sm:$0xff] }
 0x22c   :  { %2531 = vst.msk [vmem:[%s5509_s2 + $0x6b8] sm:$0xff] %vm2315_vm0, %v2242_v29  ;;  %2530 = vst.msk [vmem:[%s5509_s2 + $0x6b0] sm:$0xff] %vm2315_vm0, %v2241_v30 }
 0x22d   :  { %v1675_v35 = vpop.permute.xlu1 %1674  ;;  %v1670_v36 = vpop.permute.xlu0 %1669 }
 0x22e   :  { %v2244_v37 = vmul.f32 %v1675_v35, %v516_v31  ;;  %v2243_v38 = vmul.f32 %v1670_v36, %v515_v32  ;;  %1984 = vperm.xlu1 %2610, %v290_v33   ;;  %1979 = vperm.xlu0 %2609, %v289_v34   ;;  %v534_v31 = vld [vmem:[%s5508_s1 + $0x758] sm:$0xff]  ;;  %v533_v32 = vld [vmem:[%s5508_s1 + $0x750] sm:$0xff] }
 0x230   :  { %2533 = vst.msk [vmem:[%s5509_s2 + $0x6c8] sm:$0xff] %vm2315_vm0, %v2244_v37  ;;  %2532 = vst.msk [vmem:[%s5509_s2 + $0x6c0] sm:$0xff] %vm2315_vm0, %v2243_v38  ;;  %v536_v37 = vld [vmem:[%s5508_s1 + $0x768] sm:$0xff]  ;;  %v535_v38 = vld [vmem:[%s5508_s1 + $0x760] sm:$0xff] }
 0x231   :  { %v1685_v43 = vpop.permute.xlu1 %1684  ;;  %v1680_v44 = vpop.permute.xlu0 %1679 }
 0x232   :  { %v2246_v45 = vmul.f32 %v1685_v43, %v518_v39  ;;  %v2245_v46 = vmul.f32 %v1680_v44, %v517_v40  ;;  %1994 = vperm.xlu1 %2610, %v292_v41   ;;  %1989 = vperm.xlu0 %2609, %v291_v42   ;;  %v538_v43 = vld [vmem:[%s5508_s1 + $0x778] sm:$0xff]  ;;  %v537_v44 = vld [vmem:[%s5508_s1 + $0x770] sm:$0xff] }
 0x234   :  { %2535 = vst.msk [vmem:[%s5509_s2 + $0x6d8] sm:$0xff] %vm2315_vm0, %v2246_v45  ;;  %2534 = vst.msk [vmem:[%s5509_s2 + $0x6d0] sm:$0xff] %vm2315_vm0, %v2245_v46 }
 0x235   :  { %v1695_v51 = vpop.permute.xlu1 %1694  ;;  %v1690_v52 = vpop.permute.xlu0 %1689 }
 0x236   :  { %v2248_v53 = vmul.f32 %v1695_v51, %v520_v47  ;;  %v2247_v54 = vmul.f32 %v1690_v52, %v519_v48  ;;  %2004 = vperm.xlu1 %2610, %v294_v49   ;;  %1999 = vperm.xlu0 %2609, %v293_v50   ;;  %v540_v49 = vld [vmem:[%s5508_s1 + $0x788] sm:$0xff]  ;;  %v539_v50 = vld [vmem:[%s5508_s1 + $0x780] sm:$0xff] }
 0x238   :  { %2537 = vst.msk [vmem:[%s5509_s2 + $0x6e8] sm:$0xff] %vm2315_vm0, %v2248_v53  ;;  %2536 = vst.msk [vmem:[%s5509_s2 + $0x6e0] sm:$0xff] %vm2315_vm0, %v2247_v54 }
 0x239   :  { %v1705_v59 = vpop.permute.xlu1 %1704  ;;  %v1700_v60 = vpop.permute.xlu0 %1699 }
 0x23a   :  { %v2250_v61 = vmul.f32 %v1705_v59, %v522_v55  ;;  %v2249_v62 = vmul.f32 %v1700_v60, %v521_v56  ;;  %2014 = vperm.xlu1 %2610, %v296_v57   ;;  %2009 = vperm.xlu0 %2609, %v295_v58   ;;  %v542_v55 = vld [vmem:[%s5508_s1 + $0x798] sm:$0xff]  ;;  %v541_v56 = vld [vmem:[%s5508_s1 + $0x790] sm:$0xff] }
 0x23c   :  { %2539 = vst.msk [vmem:[%s5509_s2 + $0x6f8] sm:$0xff] %vm2315_vm0, %v2250_v61  ;;  %2538 = vst.msk [vmem:[%s5509_s2 + $0x6f0] sm:$0xff] %vm2315_vm0, %v2249_v62  ;;  %v544_v61 = vld [vmem:[%s5508_s1 + $0x7a8] sm:$0xff]  ;;  %v543_v62 = vld [vmem:[%s5508_s1 + $0x7a0] sm:$0xff] }
 0x23d   :  { %v1715_v3 = vpop.permute.xlu1 %1714  ;;  %v1710_v4 = vpop.permute.xlu0 %1709 }
 0x23e   :  { %v2252_v5 = vmul.f32 %v1715_v3, %v524_v63  ;;  %v2251_v6 = vmul.f32 %v1710_v4, %v523_v0  ;;  %2024 = vperm.xlu1 %2610, %v298_v1   ;;  %2019 = vperm.xlu0 %2609, %v297_v2   ;;  %v546_v3 = vld [vmem:[%s5508_s1 + $0x7b8] sm:$0xff]  ;;  %v545_v4 = vld [vmem:[%s5508_s1 + $0x7b0] sm:$0xff] }
 0x240   :  { %2541 = vst.msk [vmem:[%s5509_s2 + $0x708] sm:$0xff] %vm2315_vm0, %v2252_v5  ;;  %2540 = vst.msk [vmem:[%s5509_s2 + $0x700] sm:$0xff] %vm2315_vm0, %v2251_v6 }
 0x241   :  { %v1725_v9 = vpop.permute.xlu1 %1724  ;;  %v1720_v10 = vpop.permute.xlu0 %1719 }
 0x242   :  { %v2254_v11 = vmul.f32 %v1725_v9, %v526_v7  ;;  %v2253_v12 = vmul.f32 %v1720_v10, %v525_v8  ;;  %v548_v9 = vld [vmem:[%s5508_s1 + $0x7c8] sm:$0xff]  ;;  %v547_v10 = vld [vmem:[%s5508_s1 + $0x7c0] sm:$0xff] }
 0x244   :  { %2543 = vst.msk [vmem:[%s5509_s2 + $0x718] sm:$0xff] %vm2315_vm0, %v2254_v11  ;;  %2542 = vst.msk [vmem:[%s5509_s2 + $0x710] sm:$0xff] %vm2315_vm0, %v2253_v12 }
 0x245   :  { %v1735_v15 = vpop.permute.xlu1 %1734  ;;  %v1730_v16 = vpop.permute.xlu0 %1729 }
 0x246   :  { %v2256_v17 = vmul.f32 %v1735_v15, %v528_v13  ;;  %v2255_v18 = vmul.f32 %v1730_v16, %v527_v14  ;;  %v550_v15 = vld [vmem:[%s5508_s1 + $0x7d8] sm:$0xff]  ;;  %v549_v16 = vld [vmem:[%s5508_s1 + $0x7d0] sm:$0xff] }
 0x248   :  { %2545 = vst.msk [vmem:[%s5509_s2 + $0x728] sm:$0xff] %vm2315_vm0, %v2256_v17  ;;  %2544 = vst.msk [vmem:[%s5509_s2 + $0x720] sm:$0xff] %vm2315_vm0, %v2255_v18 }
 0x249   :  { %v1745_v21 = vpop.permute.xlu1 %1744  ;;  %v1740_v22 = vpop.permute.xlu0 %1739 }
 0x24a   :  { %v2258_v23 = vmul.f32 %v1745_v21, %v530_v19  ;;  %v2257_v24 = vmul.f32 %v1740_v22, %v529_v20  ;;  %v552_v21 = vld [vmem:[%s5508_s1 + $0x7e8] sm:$0xff]  ;;  %v551_v22 = vld [vmem:[%s5508_s1 + $0x7e0] sm:$0xff] }
 0x24c   :  { %2547 = vst.msk [vmem:[%s5509_s2 + $0x738] sm:$0xff] %vm2315_vm0, %v2258_v23  ;;  %2546 = vst.msk [vmem:[%s5509_s2 + $0x730] sm:$0xff] %vm2315_vm0, %v2257_v24 }
 0x24d   :  { %v1755_v27 = vpop.permute.xlu1 %1754  ;;  %v1750_v28 = vpop.permute.xlu0 %1749 }
 0x24e   :  { %v2260_v29 = vmul.f32 %v1755_v27, %v532_v25  ;;  %v2259_v30 = vmul.f32 %v1750_v28, %v531_v26  ;;  %v554_v27 = vld [vmem:[%s5508_s1 + $0x7f8] sm:$0xff]  ;;  %v553_v28 = vld [vmem:[%s5508_s1 + $0x7f0] sm:$0xff] }
 0x250   :  { %2549 = vst.msk [vmem:[%s5509_s2 + $0x748] sm:$0xff] %vm2315_vm0, %v2260_v29  ;;  %2548 = vst.msk [vmem:[%s5509_s2 + $0x740] sm:$0xff] %vm2315_vm0, %v2259_v30 }
 0x251   :  { %v1765_v33 = vpop.permute.xlu1 %1764  ;;  %v1760_v34 = vpop.permute.xlu0 %1759 }
 0x252   :  { %v2262_v35 = vmul.f32 %v1765_v33, %v534_v31  ;;  %v2261_v36 = vmul.f32 %v1760_v34, %v533_v32  ;;  %v556_v33 = vld [vmem:[%s5508_s1 + $0x808] sm:$0xff]  ;;  %v555_v34 = vld [vmem:[%s5508_s1 + $0x800] sm:$0xff] }
 0x254   :  { %2551 = vst.msk [vmem:[%s5509_s2 + $0x758] sm:$0xff] %vm2315_vm0, %v2262_v35  ;;  %2550 = vst.msk [vmem:[%s5509_s2 + $0x750] sm:$0xff] %vm2315_vm0, %v2261_v36 }
 0x255   :  { %v1775_v39 = vpop.permute.xlu1 %1774  ;;  %v1770_v40 = vpop.permute.xlu0 %1769 }
 0x256   :  { %v2264_v41 = vmul.f32 %v1775_v39, %v536_v37  ;;  %v2263_v42 = vmul.f32 %v1770_v40, %v535_v38  ;;  %v558_v39 = vld [vmem:[%s5508_s1 + $0x818] sm:$0xff]  ;;  %v557_v40 = vld [vmem:[%s5508_s1 + $0x810] sm:$0xff] }
 0x258   :  { %2553 = vst.msk [vmem:[%s5509_s2 + $0x768] sm:$0xff] %vm2315_vm0, %v2264_v41  ;;  %2552 = vst.msk [vmem:[%s5509_s2 + $0x760] sm:$0xff] %vm2315_vm0, %v2263_v42 }
 0x259   :  { %v1785_v45 = vpop.permute.xlu1 %1784  ;;  %v1780_v46 = vpop.permute.xlu0 %1779 }
 0x25a   :  { %v2266_v47 = vmul.f32 %v1785_v45, %v538_v43  ;;  %v2265_v48 = vmul.f32 %v1780_v46, %v537_v44  ;;  %v560_v45 = vld [vmem:[%s5508_s1 + $0x828] sm:$0xff]  ;;  %v559_v46 = vld [vmem:[%s5508_s1 + $0x820] sm:$0xff] }
 0x25c   :  { %2555 = vst.msk [vmem:[%s5509_s2 + $0x778] sm:$0xff] %vm2315_vm0, %v2266_v47  ;;  %2554 = vst.msk [vmem:[%s5509_s2 + $0x770] sm:$0xff] %vm2315_vm0, %v2265_v48 }
 0x25d   :  { %v1795_v51 = vpop.permute.xlu1 %1794  ;;  %v1790_v52 = vpop.permute.xlu0 %1789 }
 0x25e   :  { %v2268_v53 = vmul.f32 %v1795_v51, %v540_v49  ;;  %v2267_v54 = vmul.f32 %v1790_v52, %v539_v50  ;;  %v562_v51 = vld [vmem:[%s5508_s1 + $0x838] sm:$0xff]  ;;  %v561_v52 = vld [vmem:[%s5508_s1 + $0x830] sm:$0xff] }
 0x260   :  { %2557 = vst.msk [vmem:[%s5509_s2 + $0x788] sm:$0xff] %vm2315_vm0, %v2268_v53  ;;  %2556 = vst.msk [vmem:[%s5509_s2 + $0x780] sm:$0xff] %vm2315_vm0, %v2267_v54 }
 0x261   :  { %v1805_v57 = vpop.permute.xlu1 %1804  ;;  %v1800_v58 = vpop.permute.xlu0 %1799 }
 0x262   :  { %v2270_v59 = vmul.f32 %v1805_v57, %v542_v55  ;;  %v2269_v60 = vmul.f32 %v1800_v58, %v541_v56  ;;  %v564_v57 = vld [vmem:[%s5508_s1 + $0x848] sm:$0xff]  ;;  %v563_v58 = vld [vmem:[%s5508_s1 + $0x840] sm:$0xff] }
 0x264   :  { %2559 = vst.msk [vmem:[%s5509_s2 + $0x798] sm:$0xff] %vm2315_vm0, %v2270_v59  ;;  %2558 = vst.msk [vmem:[%s5509_s2 + $0x790] sm:$0xff] %vm2315_vm0, %v2269_v60 }
 0x265   :  { %v1815_v63 = vpop.permute.xlu1 %1814  ;;  %v1810_v0 = vpop.permute.xlu0 %1809 }
 0x266   :  { %v2272_v1 = vmul.f32 %v1815_v63, %v544_v61  ;;  %v2271_v2 = vmul.f32 %v1810_v0, %v543_v62  ;;  %v566_v63 = vld [vmem:[%s5508_s1 + $0x858] sm:$0xff]  ;;  %v565_v0 = vld [vmem:[%s5508_s1 + $0x850] sm:$0xff] }
 0x268   :  { %2561 = vst.msk [vmem:[%s5509_s2 + $0x7a8] sm:$0xff] %vm2315_vm0, %v2272_v1  ;;  %2560 = vst.msk [vmem:[%s5509_s2 + $0x7a0] sm:$0xff] %vm2315_vm0, %v2271_v2 }
 0x269   :  { %v1825_v5 = vpop.permute.xlu1 %1824  ;;  %v1820_v6 = vpop.permute.xlu0 %1819 }
 0x26a   :  { %v2274_v7 = vmul.f32 %v1825_v5, %v546_v3  ;;  %v2273_v8 = vmul.f32 %v1820_v6, %v545_v4  ;;  %v568_v5 = vld [vmem:[%s5508_s1 + $0x868] sm:$0xff]  ;;  %v567_v6 = vld [vmem:[%s5508_s1 + $0x860] sm:$0xff] }
 0x26c   :  { %2563 = vst.msk [vmem:[%s5509_s2 + $0x7b8] sm:$0xff] %vm2315_vm0, %v2274_v7  ;;  %2562 = vst.msk [vmem:[%s5509_s2 + $0x7b0] sm:$0xff] %vm2315_vm0, %v2273_v8 }
 0x26d   :  { %v1835_v11 = vpop.permute.xlu1 %1834  ;;  %v1830_v12 = vpop.permute.xlu0 %1829 }
 0x26e   :  { %v2276_v13 = vmul.f32 %v1835_v11, %v548_v9  ;;  %v2275_v14 = vmul.f32 %v1830_v12, %v547_v10  ;;  %v570_v11 = vld [vmem:[%s5508_s1 + $0x878] sm:$0xff]  ;;  %v569_v12 = vld [vmem:[%s5508_s1 + $0x870] sm:$0xff] }
 0x270   :  { %2565 = vst.msk [vmem:[%s5509_s2 + $0x7c8] sm:$0xff] %vm2315_vm0, %v2276_v13  ;;  %2564 = vst.msk [vmem:[%s5509_s2 + $0x7c0] sm:$0xff] %vm2315_vm0, %v2275_v14 }
 0x271   :  { %v1845_v17 = vpop.permute.xlu1 %1844  ;;  %v1840_v18 = vpop.permute.xlu0 %1839 }
 0x272   :  { %v2278_v19 = vmul.f32 %v1845_v17, %v550_v15  ;;  %v2277_v20 = vmul.f32 %v1840_v18, %v549_v16  ;;  %v572_v17 = vld [vmem:[%s5508_s1 + $0x888] sm:$0xff]  ;;  %v571_v18 = vld [vmem:[%s5508_s1 + $0x880] sm:$0xff] }
 0x274   :  { %2567 = vst.msk [vmem:[%s5509_s2 + $0x7d8] sm:$0xff] %vm2315_vm0, %v2278_v19  ;;  %2566 = vst.msk [vmem:[%s5509_s2 + $0x7d0] sm:$0xff] %vm2315_vm0, %v2277_v20 }
 0x275   :  { %v1855_v23 = vpop.permute.xlu1 %1854  ;;  %v1850_v24 = vpop.permute.xlu0 %1849 }
 0x276   :  { %v2280_v25 = vmul.f32 %v1855_v23, %v552_v21  ;;  %v2279_v26 = vmul.f32 %v1850_v24, %v551_v22  ;;  %v574_v23 = vld [vmem:[%s5508_s1 + $0x898] sm:$0xff]  ;;  %v573_v24 = vld [vmem:[%s5508_s1 + $0x890] sm:$0xff] }
 0x278   :  { %2569 = vst.msk [vmem:[%s5509_s2 + $0x7e8] sm:$0xff] %vm2315_vm0, %v2280_v25  ;;  %2568 = vst.msk [vmem:[%s5509_s2 + $0x7e0] sm:$0xff] %vm2315_vm0, %v2279_v26 }
 0x279   :  { %v1865_v29 = vpop.permute.xlu1 %1864  ;;  %v1860_v30 = vpop.permute.xlu0 %1859 }
 0x27a   :  { %v2282_v31 = vmul.f32 %v1865_v29, %v554_v27  ;;  %v2281_v32 = vmul.f32 %v1860_v30, %v553_v28  ;;  %v576_v29 = vld [vmem:[%s5508_s1 + $0x8a8] sm:$0xff]  ;;  %v575_v30 = vld [vmem:[%s5508_s1 + $0x8a0] sm:$0xff] }
 0x27c   :  { %2571 = vst.msk [vmem:[%s5509_s2 + $0x7f8] sm:$0xff] %vm2315_vm0, %v2282_v31  ;;  %2570 = vst.msk [vmem:[%s5509_s2 + $0x7f0] sm:$0xff] %vm2315_vm0, %v2281_v32 }
 0x27d   :  { %v1875_v35 = vpop.permute.xlu1 %1874  ;;  %v1870_v36 = vpop.permute.xlu0 %1869 }
 0x27e   :  { %v2284_v37 = vmul.f32 %v1875_v35, %v556_v33  ;;  %v2283_v38 = vmul.f32 %v1870_v36, %v555_v34  ;;  %v578_v35 = vld [vmem:[%s5508_s1 + $0x8b8] sm:$0xff]  ;;  %v577_v36 = vld [vmem:[%s5508_s1 + $0x8b0] sm:$0xff] }
 0x280   :  { %2573 = vst.msk [vmem:[%s5509_s2 + $0x808] sm:$0xff] %vm2315_vm0, %v2284_v37  ;;  %2572 = vst.msk [vmem:[%s5509_s2 + $0x800] sm:$0xff] %vm2315_vm0, %v2283_v38 }
 0x281   :  { %v1885_v41 = vpop.permute.xlu1 %1884  ;;  %v1880_v42 = vpop.permute.xlu0 %1879 }
 0x282   :  { %v2286_v43 = vmul.f32 %v1885_v41, %v558_v39  ;;  %v2285_v44 = vmul.f32 %v1880_v42, %v557_v40  ;;  %v580_v41 = vld [vmem:[%s5508_s1 + $0x8c8] sm:$0xff]  ;;  %v579_v42 = vld [vmem:[%s5508_s1 + $0x8c0] sm:$0xff] }
 0x284   :  { %2575 = vst.msk [vmem:[%s5509_s2 + $0x818] sm:$0xff] %vm2315_vm0, %v2286_v43  ;;  %2574 = vst.msk [vmem:[%s5509_s2 + $0x810] sm:$0xff] %vm2315_vm0, %v2285_v44 }
 0x285   :  { %v1895_v47 = vpop.permute.xlu1 %1894  ;;  %v1890_v48 = vpop.permute.xlu0 %1889 }
 0x286   :  { %v2288_v49 = vmul.f32 %v1895_v47, %v560_v45  ;;  %v2287_v50 = vmul.f32 %v1890_v48, %v559_v46  ;;  %v582_v47 = vld [vmem:[%s5508_s1 + $0x8d8] sm:$0xff]  ;;  %v581_v48 = vld [vmem:[%s5508_s1 + $0x8d0] sm:$0xff] }
 0x288   :  { %2577 = vst.msk [vmem:[%s5509_s2 + $0x828] sm:$0xff] %vm2315_vm0, %v2288_v49  ;;  %2576 = vst.msk [vmem:[%s5509_s2 + $0x820] sm:$0xff] %vm2315_vm0, %v2287_v50 }
 0x289   :  { %v1905_v53 = vpop.permute.xlu1 %1904  ;;  %v1900_v54 = vpop.permute.xlu0 %1899 }
 0x28a   :  { %v2290_v55 = vmul.f32 %v1905_v53, %v562_v51  ;;  %v2289_v56 = vmul.f32 %v1900_v54, %v561_v52  ;;  %v584_v53 = vld [vmem:[%s5508_s1 + $0x8e8] sm:$0xff]  ;;  %v583_v54 = vld [vmem:[%s5508_s1 + $0x8e0] sm:$0xff] }
 0x28c   :  { %2579 = vst.msk [vmem:[%s5509_s2 + $0x838] sm:$0xff] %vm2315_vm0, %v2290_v55  ;;  %2578 = vst.msk [vmem:[%s5509_s2 + $0x830] sm:$0xff] %vm2315_vm0, %v2289_v56 }
 0x28d   :  { %v1915_v59 = vpop.permute.xlu1 %1914  ;;  %v1910_v60 = vpop.permute.xlu0 %1909 }
 0x28e   :  { %v2292_v61 = vmul.f32 %v1915_v59, %v564_v57  ;;  %v2291_v62 = vmul.f32 %v1910_v60, %v563_v58  ;;  %v586_v59 = vld [vmem:[%s5508_s1 + $0x8f8] sm:$0xff]  ;;  %v585_v60 = vld [vmem:[%s5508_s1 + $0x8f0] sm:$0xff] }
 0x290   :  { %2581 = vst.msk [vmem:[%s5509_s2 + $0x848] sm:$0xff] %vm2315_vm0, %v2292_v61  ;;  %2580 = vst.msk [vmem:[%s5509_s2 + $0x840] sm:$0xff] %vm2315_vm0, %v2291_v62 }
 0x291   :  { %v1925_v1 = vpop.permute.xlu1 %1924  ;;  %v1920_v2 = vpop.permute.xlu0 %1919 }
 0x292   :  { %v2294_v3 = vmul.f32 %v1925_v1, %v566_v63  ;;  %v2293_v4 = vmul.f32 %v1920_v2, %v565_v0 }
 0x294   :  { %2583 = vst.msk [vmem:[%s5509_s2 + $0x858] sm:$0xff] %vm2315_vm0, %v2294_v3  ;;  %2582 = vst.msk [vmem:[%s5509_s2 + $0x850] sm:$0xff] %vm2315_vm0, %v2293_v4 }
 0x295   :  { %v1935_v7 = vpop.permute.xlu1 %1934  ;;  %v1930_v8 = vpop.permute.xlu0 %1929 }
 0x296   :  { %v2296_v9 = vmul.f32 %v1935_v7, %v568_v5  ;;  %v2295_v10 = vmul.f32 %v1930_v8, %v567_v6 }
 0x298   :  { %2585 = vst.msk [vmem:[%s5509_s2 + $0x868] sm:$0xff] %vm2315_vm0, %v2296_v9  ;;  %2584 = vst.msk [vmem:[%s5509_s2 + $0x860] sm:$0xff] %vm2315_vm0, %v2295_v10 }
 0x299   :  { %v1945_v13 = vpop.permute.xlu1 %1944  ;;  %v1940_v14 = vpop.permute.xlu0 %1939 }
 0x29a   :  { %v2298_v15 = vmul.f32 %v1945_v13, %v570_v11  ;;  %v2297_v16 = vmul.f32 %v1940_v14, %v569_v12 }
 0x29c   :  { %2587 = vst.msk [vmem:[%s5509_s2 + $0x878] sm:$0xff] %vm2315_vm0, %v2298_v15  ;;  %2586 = vst.msk [vmem:[%s5509_s2 + $0x870] sm:$0xff] %vm2315_vm0, %v2297_v16 }
 0x29d   :  { %v1955_v19 = vpop.permute.xlu1 %1954  ;;  %v1950_v20 = vpop.permute.xlu0 %1949 }
 0x29e   :  { %v2300_v21 = vmul.f32 %v1955_v19, %v572_v17  ;;  %v2299_v22 = vmul.f32 %v1950_v20, %v571_v18 }
 0x2a0   :  { %2589 = vst.msk [vmem:[%s5509_s2 + $0x888] sm:$0xff] %vm2315_vm0, %v2300_v21  ;;  %2588 = vst.msk [vmem:[%s5509_s2 + $0x880] sm:$0xff] %vm2315_vm0, %v2299_v22 }
 0x2a1   :  { %v1965_v25 = vpop.permute.xlu1 %1964  ;;  %v1960_v26 = vpop.permute.xlu0 %1959 }
 0x2a2   :  { %v2302_v27 = vmul.f32 %v1965_v25, %v574_v23  ;;  %v2301_v28 = vmul.f32 %v1960_v26, %v573_v24 }
 0x2a4   :  { %2591 = vst.msk [vmem:[%s5509_s2 + $0x898] sm:$0xff] %vm2315_vm0, %v2302_v27  ;;  %2590 = vst.msk [vmem:[%s5509_s2 + $0x890] sm:$0xff] %vm2315_vm0, %v2301_v28 }
 0x2a5   :  { %v1975_v31 = vpop.permute.xlu1 %1974  ;;  %v1970_v32 = vpop.permute.xlu0 %1969 }
 0x2a6   :  { %v2304_v33 = vmul.f32 %v1975_v31, %v576_v29  ;;  %v2303_v34 = vmul.f32 %v1970_v32, %v575_v30 }
 0x2a8   :  { %2593 = vst.msk [vmem:[%s5509_s2 + $0x8a8] sm:$0xff] %vm2315_vm0, %v2304_v33  ;;  %2592 = vst.msk [vmem:[%s5509_s2 + $0x8a0] sm:$0xff] %vm2315_vm0, %v2303_v34 }
 0x2a9   :  { %v1985_v37 = vpop.permute.xlu1 %1984  ;;  %v1980_v38 = vpop.permute.xlu0 %1979 }
 0x2aa   :  { %v2306_v39 = vmul.f32 %v1985_v37, %v578_v35  ;;  %v2305_v40 = vmul.f32 %v1980_v38, %v577_v36 }
 0x2ac   :  { %2595 = vst.msk [vmem:[%s5509_s2 + $0x8b8] sm:$0xff] %vm2315_vm0, %v2306_v39  ;;  %2594 = vst.msk [vmem:[%s5509_s2 + $0x8b0] sm:$0xff] %vm2315_vm0, %v2305_v40 }
 0x2ad   :  { %v1995_v43 = vpop.permute.xlu1 %1994  ;;  %v1990_v44 = vpop.permute.xlu0 %1989 }
 0x2ae   :  { %v2308_v45 = vmul.f32 %v1995_v43, %v580_v41  ;;  %v2307_v46 = vmul.f32 %v1990_v44, %v579_v42 }
 0x2b0   :  { %2597 = vst.msk [vmem:[%s5509_s2 + $0x8c8] sm:$0xff] %vm2315_vm0, %v2308_v45  ;;  %2596 = vst.msk [vmem:[%s5509_s2 + $0x8c0] sm:$0xff] %vm2315_vm0, %v2307_v46 }
 0x2b1   :  { %v2005_v49 = vpop.permute.xlu1 %2004  ;;  %v2000_v50 = vpop.permute.xlu0 %1999 }
 0x2b2   :  { %v2310_v51 = vmul.f32 %v2005_v49, %v582_v47  ;;  %v2309_v52 = vmul.f32 %v2000_v50, %v581_v48 }
 0x2b4   :  { %2599 = vst.msk [vmem:[%s5509_s2 + $0x8d8] sm:$0xff] %vm2315_vm0, %v2310_v51  ;;  %2598 = vst.msk [vmem:[%s5509_s2 + $0x8d0] sm:$0xff] %vm2315_vm0, %v2309_v52 }
 0x2b5   :  { %v2015_v55 = vpop.permute.xlu1 %2014  ;;  %v2010_v56 = vpop.permute.xlu0 %2009 }
 0x2b6   :  { %v2312_v57 = vmul.f32 %v2015_v55, %v584_v53  ;;  %v2311_v58 = vmul.f32 %v2010_v56, %v583_v54 }
 0x2b8   :  { %2601 = vst.msk [vmem:[%s5509_s2 + $0x8e8] sm:$0xff] %vm2315_vm0, %v2312_v57  ;;  %2600 = vst.msk [vmem:[%s5509_s2 + $0x8e0] sm:$0xff] %vm2315_vm0, %v2311_v58 }
 0x2b9   :  { %v2025_v61 = vpop.permute.xlu1 %2024  ;;  %v2020_v62 = vpop.permute.xlu0 %2019 }
 0x2ba   :  { %v2314_v63 = vmul.f32 %v2025_v61, %v586_v59  ;;  %v2313_v0 = vmul.f32 %v2020_v62, %v585_v60 }
 0x2bc   :  { %2603 = vst.msk [vmem:[%s5509_s2 + $0x8f8] sm:$0xff] %vm2315_vm0, %v2314_v63  ;;  %2602 = vst.msk [vmem:[%s5509_s2 + $0x8f0] sm:$0xff] %vm2315_vm0, %v2313_v0 }

</bundles_post_ra>
